<compile_context>
chip_gen: v7x
topology: tpu7x:2x2x1
jax: 0.10.0
libtpu: 0.0.40
codegen_flags: <defaults>
</compile_context>

<pallas_src>
import jax
import jax.numpy as jnp
from jax import lax
from jax.experimental import pallas as pl
from jax.experimental.pallas import tpu as pltpu

BN_EPS = 1e-5


# ----------------------------- Pallas kernel ---------------------------------

def _interleaved_kernel(gate_ref, x_ref, t_ref, gamma_ref, beta_ref,
                        mw_ref, bias_ref, res_ref, sel_ref, selt_ref,
                        hmask_ref, out_ref):
    """One path (freq or img): gated mix -> BN (batch stats) -> 3x3 conv -> ReLU -> +res.

    gate_ref : (1, 1)          gate = sigmoid(alpha) / sigmoid(beta)
    x_ref    : (B*H, W*C)      primary stream, lane index = w*C + c
    t_ref    : (B*H, W*C)      transformed other stream (fft2 / ifft2, re/im stacked)
    gamma_ref: (1, C)          BN scale
    beta_ref : (1, C)          BN shift
    mw_ref   : (3*W*C, W*O)    banded conv weights (W taps + channel mix pre-baked)
    bias_ref : (1, W*O)        conv bias tiled over W
    res_ref  : (B*H, W*O)      residual (aliased to out)
    sel_ref  : (W*C, C)        one-hot lane -> channel fold matrix
    selt_ref : (C, W*C)        one-hot channel -> lane broadcast matrix
    hmask_ref: (B*H, 2)        col 0: 0 at rows h == 0; col 1: 0 at rows h == H-1
    out_ref  : (B*H, W*O)
    """
    BH, WC = x_ref.shape
    C = gamma_ref.shape[-1]
    n = float(BH * (WC // C))      # B*H*W elements per channel

    # --- gated mix: gate * primary + (1 - gate) * transform(other) ---
    gate = gate_ref[0, 0]
    mix = gate * x_ref[...] + (1.0 - gate) * t_ref[...]

    # --- BatchNorm2d, training-mode batch stats, single pass (sum / sum-sq) ---
    sums = jnp.concatenate(
        [jnp.sum(mix, axis=0, keepdims=True),
         jnp.sum(mix * mix, axis=0, keepdims=True)], axis=0)              # (2, W*C)
    stats = jnp.dot(sums, sel_ref[...], preferred_element_type=jnp.float32)  # (2, C)
    mean = stats[0:1] / n
    var = stats[1:2] / n - mean * mean                                    # biased variance
    scale_c = gamma_ref[...] * lax.rsqrt(var + BN_EPS)                    # (1, C)
    shift_c = beta_ref[...] - mean * scale_c                              # (1, C)
    aff = jnp.concatenate([scale_c, shift_c], axis=0)                     # (2, C)
    aff_l = jnp.dot(aff, selt_ref[...], preferred_element_type=jnp.float32)  # (2, W*C)
    y = mix * aff_l[0:1] + aff_l[1:2]                                     # normalized activations

    # --- 3x3 'same' conv as ONE matmul (no padded scratch buffer):
    #     H halo via sublane rolls + boundary masks; W taps + channel mixing
    #     are encoded in the banded (3*W*C, W*O) weight matrix. ---
    y_prev = hmask_ref[:, 0:1] * pltpu.roll(y, 1, axis=0)        # row h-1 (0 at h==0)
    y_next = hmask_ref[:, 1:2] * pltpu.roll(y, BH - 1, axis=0)   # row h+1 (0 at h==H-1)
    a = jnp.concatenate([y_prev, y, y_next], axis=1)             # (B*H, 3*W*C)
    acc = jnp.dot(a, mw_ref[...], preferred_element_type=jnp.float32)     # (B*H, W*O)
    acc = acc + bias_ref[...]

    # TODO(synk): `modified_act_fn` is undefined in the source module; using ReLU.
    acc = jnp.maximum(acc, 0.0)

    out_ref[...] = (acc + res_ref[...]).astype(out_ref.dtype)


# ----------------------------- glue / wrapper ---------------------------------

def _to_lane_dense(x5):
    # (B, 2, C, H, W) -> (B*H, W*(2C)); lane index = w*(2C) + (part*C + c)
    b, two, c, h, w = x5.shape
    x = x5.reshape(b, two * c, h, w).transpose(0, 2, 3, 1)    # NHWC
    return x.reshape(b * h, w * two * c)


def _from_lane_dense(x2, B, H, W):
    # (B*H, W*O) -> (B, 2, O//2, H, W)
    wo = x2.shape[-1]
    o = wo // W
    x = x2.reshape(B, H, W, o).transpose(0, 3, 1, 2)          # (B, O, H, W)
    return x.reshape(B, 2, o // 2, H, W)


def _expand_conv_weight(wk, W):
    """(3, 3, C, O) HWIO -> banded (3*W*C, W*O) matrix.

    M[ky*W*C + w'*C + c, w*O + o] = wk[ky, w'-w+1, c, o] if |w'-w| <= 1 else 0,
    so the W-direction shifts, the W zero-padding and the channel contraction
    all happen inside one lane-dense MXU matmul.
    """
    kh, kw, c, o = wk.shape
    wp = jnp.arange(W)[:, None]                 # input column w'
    w = jnp.arange(W)[None, :]                  # output column w
    dx = wp - w + 1
    valid = (dx >= 0) & (dx < kw)
    dxc = jnp.clip(dx, 0, kw - 1)
    m = wk[:, dxc]                              # (kh, W, W, C, O)
    m = jnp.where(valid[None, :, :, None, None], m, 0.0)
    m = m.transpose(0, 1, 3, 2, 4)              # (kh, w', C, w, O)
    return m.reshape(kh * W * c, W * o)


def interleaved_layer_forward(params, freq, img, freq0, img0):
    """Matches InterleavedLayer.forward (include_img=True, training-mode BN)."""
    B, _, Cin, H, W = freq.shape
    C = 2 * Cin
    O = params["conv_freq_w"].shape[-1]
    BH, WC, WO = B * H, W * C, W * O

    # FFT mixing terms (glue; no in-kernel FFT primitive on TPU Pallas)
    freq_c = freq[:, 0] + 1j * freq[:, 1]
    img_c = img[:, 0] + 1j * img[:, 1]
    fft_img = jnp.fft.fft2(img_c)
    ifft_freq = jnp.fft.ifft2(freq_c)

    # stack the two paths (freq path = 0, img path = 1) along a grid axis
    x = jnp.stack([_to_lane_dense(freq), _to_lane_dense(img)])                 # (2, BH, WC)
    t = jnp.stack([
        _to_lane_dense(jnp.stack([fft_img.real, fft_img.imag], axis=1)),
        _to_lane_dense(jnp.stack([ifft_freq.real, ifft_freq.imag], axis=1)),
    ])                                                                         # (2, BH, WC)
    res = jnp.stack([_to_lane_dense(freq0), _to_lane_dense(img0)])             # (2, BH, WO)

    gates = jnp.stack([jax.nn.sigmoid(params["alpha"]),
                       jax.nn.sigmoid(params["beta"])]).reshape(2, 1, 1).astype(jnp.float32)
    gamma = jnp.stack([params["bn_freq_gamma"], params["bn_img_gamma"]])       # (2, 1, C)
    betap = jnp.stack([params["bn_freq_beta"], params["bn_img_beta"]])         # (2, 1, C)
    mw = jnp.stack([_expand_conv_weight(params["conv_freq_w"], W),
                    _expand_conv_weight(params["conv_img_w"], W)])             # (2, 3*WC, WO)
    bias = jnp.stack([jnp.tile(params["conv_freq_b"].reshape(-1), W),
                      jnp.tile(params["conv_img_b"].reshape(-1), W)]).reshape(2, 1, WO)

    # constant layout helpers (built once in glue)
    chan = jnp.arange(WC) % C
    sel = (chan[:, None] == jnp.arange(C)[None, :]).astype(jnp.float32)        # (WC, C)
    sel_t = sel.T                                                              # (C, WC)
    h_idx = jnp.arange(BH) % H
    hmask = jnp.stack([(h_idx != 0).astype(jnp.float32),
                       (h_idx != H - 1).astype(jnp.float32)], axis=1)          # (BH, 2)

    out = pl.pallas_call(
        _interleaved_kernel,
        out_shape=jax.ShapeDtypeStruct((2, BH, WO), jnp.float32),
        grid=(2,),
        in_specs=[
            pl.BlockSpec((None, 1, 1), lambda p: (p, 0, 0)),        # gate
            pl.BlockSpec((None, BH, WC), lambda p: (p, 0, 0)),      # x
            pl.BlockSpec((None, BH, WC), lambda p: (p, 0, 0)),      # t
            pl.BlockSpec((None, 1, C), lambda p: (p, 0, 0)),        # gamma
            pl.BlockSpec((None, 1, C), lambda p: (p, 0, 0)),        # beta
            pl.BlockSpec((None, 3 * WC, WO), lambda p: (p, 0, 0)),  # banded conv weight
            pl.BlockSpec((None, 1, WO), lambda p: (p, 0, 0)),       # bias
            pl.BlockSpec((None, BH, WO), lambda p: (p, 0, 0)),      # residual
            pl.BlockSpec((WC, C), lambda p: (0, 0)),                # sel
            pl.BlockSpec((C, WC), lambda p: (0, 0)),                # sel_t
            pl.BlockSpec((BH, 2), lambda p: (0, 0)),                # H-boundary masks
        ],
        out_specs=pl.BlockSpec((None, BH, WO), lambda p: (p, 0, 0)),
        input_output_aliases={7: 0},                                # res -> out, in-place add
        compiler_params=pltpu.CompilerParams(
            dimension_semantics=("parallel",)),
    )(gates, x, t, gamma, betap, mw, bias, res, sel, sel_t, hmask)

    return _from_lane_dense(out[0], B, H, W), _from_lane_dense(out[1], B, H, W)


# ---------------- pure-JAX reference (mirrors the PyTorch forward) ----------------

def _bn_ref(x, gamma, beta):  # x: (B, C, H, W)
    mean = jnp.mean(x, axis=(0, 2, 3), keepdims=True)
    var = jnp.mean(jnp.square(x - mean), axis=(0, 2, 3), keepdims=True)
    xn = (x - mean) * lax.rsqrt(var + BN_EPS)
    c = x.shape[1]
    return xn * gamma.reshape(1, c, 1, 1) + beta.reshape(1, c, 1, 1)


def _conv_ref(x, wk, bias):  # x NCHW, wk (3,3,Cin,Cout) HWIO
    y = lax.conv_general_dilated(
        x, wk, window_strides=(1, 1), padding="SAME",
        dimension_numbers=("NCHW", "HWIO", "NCHW"),
        precision=lax.Precision.HIGHEST)
    return y + bias.reshape(1, -1, 1, 1)


def reference_forward(params, freq, img, freq0, img0):
    B, _, Cin, H, W = freq.shape
    freq_c = freq[:, 0] + 1j * freq[:, 1]
    img_c = img[:, 0] + 1j * img[:, 1]

    a = jax.nn.sigmoid(params["alpha"])[0]
    fm = (1.0 - a) * jnp.fft.fft2(img_c)
    fm = jnp.stack([fm.real, fm.imag], axis=1)
    fm = a * freq + fm
    fm = fm.reshape(B, 2 * Cin, H, W)
    fn = _bn_ref(fm, params["bn_freq_gamma"], params["bn_freq_beta"])
    fo = jnp.maximum(_conv_ref(fn, params["conv_freq_w"], params["conv_freq_b"]), 0.0)
    Cout = fo.shape[1] // 2
    fo = fo.reshape(B, 2, Cout, H, W) + freq0

    b = jax.nn.sigmoid(params["beta"])[0]
    im = (1.0 - b) * jnp.fft.ifft2(freq_c)
    im = jnp.stack([im.real, im.imag], axis=1)
    im = b * img + im
    im = im.reshape(B, 2 * Cin, H, W)
    inorm = _bn_ref(im, params["bn_img_gamma"], params["bn_img_beta"])
    io = jnp.maximum(_conv_ref(inorm, params["conv_img_w"], params["conv_img_b"]), 0.0)
    io = io.reshape(B, 2, Cout, H, W) + img0
    return fo, io


if __name__ == "__main__":
    B, in_ch, out_ch, H, W = 2, 4, 4, 16, 16
    C2, O2 = 2 * in_ch, 2 * out_ch

    ks = jax.random.split(jax.random.PRNGKey(0), 14)
    params = {
        "alpha": 0.3 * jax.random.normal(ks[0], (1,), jnp.float32),
        "beta": 0.3 * jax.random.normal(ks[1], (1,), jnp.float32),
        "bn_freq_gamma": 1.0 + 0.1 * jax.random.normal(ks[2], (1, C2), jnp.float32),
        "bn_freq_beta": 0.1 * jax.random.normal(ks[3], (1, C2), jnp.float32),
        "conv_freq_w": 0.1 * jax.random.normal(ks[4], (3, 3, C2, O2), jnp.float32),
        "conv_freq_b": 0.1 * jax.random.normal(ks[5], (1, O2), jnp.float32),
        "bn_img_gamma": 1.0 + 0.1 * jax.random.normal(ks[6], (1, C2), jnp.float32),
        "bn_img_beta": 0.1 * jax.random.normal(ks[7], (1, C2), jnp.float32),
        "conv_img_w": 0.1 * jax.random.normal(ks[8], (3, 3, C2, O2), jnp.float32),
        "conv_img_b": 0.1 * jax.random.normal(ks[9], (1, O2), jnp.float32),
    }

    freq = jax.random.normal(ks[10], (B, 2, in_ch, H, W), jnp.float32)
    img = jax.random.normal(ks[11], (B, 2, in_ch, H, W), jnp.float32)
    freq0 = jax.random.normal(ks[12], (B, 2, out_ch, H, W), jnp.float32)
    img0 = jax.random.normal(ks[13], (B, 2, out_ch, H, W), jnp.float32)

    fwd = jax.jit(interleaved_layer_forward)
    freq_out, img_out = fwd(params, freq, img, freq0, img0)
    jax.block_until_ready((freq_out, img_out))

    assert freq_out.shape == (B, 2, out_ch, H, W)
    assert img_out.shape == (B, 2, out_ch, H, W)

    ref_freq, ref_img = reference_forward(params, freq, img, freq0, img0)
    err_f = float(jnp.max(jnp.abs(freq_out - ref_freq)))
    err_i = float(jnp.max(jnp.abs(img_out - ref_img)))
    assert err_f < 2e-2 and err_i < 2e-2, (err_f, err_i)

    print("KERNEL_OK")
</pallas_src>

<mosaic_0001>
module attributes {stable_mosaic.version = 11 : i64} {
  func.func @_interleaved_kernel(%arg0: i32, %arg1: memref<1x1x1xf32, #tpu.memory_space<vmem>>, %arg2: memref<1x32x128xf32, #tpu.memory_space<vmem>>, %arg3: memref<1x32x128xf32, #tpu.memory_space<vmem>>, %arg4: memref<1x1x8xf32, #tpu.memory_space<vmem>>, %arg5: memref<1x1x8xf32, #tpu.memory_space<vmem>>, %arg6: memref<1x384x128xf32, #tpu.memory_space<vmem>>, %arg7: memref<1x1x128xf32, #tpu.memory_space<vmem>>, %arg8: memref<1x32x128xf32, #tpu.memory_space<vmem>>, %arg9: memref<128x8xf32, #tpu.memory_space<vmem>>, %arg10: memref<8x128xf32, #tpu.memory_space<vmem>>, %arg11: memref<32x2xf32, #tpu.memory_space<vmem>>, %arg12: memref<1x32x128xf32, #tpu.memory_space<vmem>>) attributes {dimension_semantics = [#tpu.dimension_semantics<parallel>], iteration_bounds = array<i64: 2>, scalar_prefetch = 0 : i64, scratch_operands = 0 : i64, tpu.core_type = #tpu.core_type<tc>, window_params = [{transform_indices = @transform_0, window_bounds = array<i64: 1, 1, 1>}, {transform_indices = @transform_1, window_bounds = array<i64: 1, 32, 128>}, {transform_indices = @transform_2, window_bounds = array<i64: 1, 32, 128>}, {transform_indices = @transform_3, window_bounds = array<i64: 1, 1, 8>}, {transform_indices = @transform_4, window_bounds = array<i64: 1, 1, 8>}, {transform_indices = @transform_5, window_bounds = array<i64: 1, 384, 128>}, {transform_indices = @transform_6, window_bounds = array<i64: 1, 1, 128>}, {transform_indices = @transform_7, window_bounds = array<i64: 1, 32, 128>}, {pipeline_mode = #tpu.pipeline_mode<synchronous>, transform_indices = @transform_8, window_bounds = array<i64: 128, 8>}, {pipeline_mode = #tpu.pipeline_mode<synchronous>, transform_indices = @transform_9, window_bounds = array<i64: 8, 128>}, {pipeline_mode = #tpu.pipeline_mode<synchronous>, transform_indices = @transform_10, window_bounds = array<i64: 32, 2>}, {transform_indices = @transform_11, window_bounds = array<i64: 1, 32, 128>}]} {
    %c0 = arith.constant 0 : index
    %c0_0 = arith.constant 0 : index
    %c0_1 = arith.constant 0 : index
    %0 = vector.load %arg1[%c0, %c0_0, %c0_1] : memref<1x1x1xf32, #tpu.memory_space<vmem>>, vector<1x1x1xf32>
    %1 = vector.extract %0[0, 0, 0] : f32 from vector<1x1x1xf32>
    %c0_2 = arith.constant 0 : index
    %c0_3 = arith.constant 0 : index
    %c0_4 = arith.constant 0 : index
    %2 = vector.load %arg2[%c0_2, %c0_3, %c0_4] : memref<1x32x128xf32, #tpu.memory_space<vmem>>, vector<1x32x128xf32>
    %3 = vector.shape_cast %2 : vector<1x32x128xf32> to vector<32x128xf32>
    %4 = vector.broadcast %1 : f32 to vector<32x128xf32>
    %5 = arith.mulf %4, %3 : vector<32x128xf32>
    %cst = arith.constant 1.000000e+00 : f32
    %6 = arith.subf %cst, %1 : f32
    %c0_5 = arith.constant 0 : index
    %c0_6 = arith.constant 0 : index
    %c0_7 = arith.constant 0 : index
    %7 = vector.load %arg3[%c0_5, %c0_6, %c0_7] : memref<1x32x128xf32, #tpu.memory_space<vmem>>, vector<1x32x128xf32>
    %8 = vector.shape_cast %7 : vector<1x32x128xf32> to vector<32x128xf32>
    %9 = vector.broadcast %6 : f32 to vector<32x128xf32>
    %10 = arith.mulf %9, %8 : vector<32x128xf32>
    %11 = arith.addf %5, %10 : vector<32x128xf32>
    %cst_8 = arith.constant dense<0.000000e+00> : vector<128xf32>
    %12 = vector.multi_reduction <add>, %11, %cst_8 [0] : vector<32x128xf32> to vector<128xf32>
    %13 = vector.shape_cast %12 : vector<128xf32> to vector<1x128xf32>
    %14 = arith.mulf %11, %11 : vector<32x128xf32>
    %cst_9 = arith.constant dense<0.000000e+00> : vector<128xf32>
    %15 = vector.multi_reduction <add>, %14, %cst_9 [0] : vector<32x128xf32> to vector<128xf32>
    %16 = vector.shape_cast %15 : vector<128xf32> to vector<1x128xf32>
    %17 = tpu.concatenate %13, %16 in 0 : vector<1x128xf32>, vector<1x128xf32> -> vector<2x128xf32>
    %c0_10 = arith.constant 0 : index
    %c0_11 = arith.constant 0 : index
    %18 = vector.load %arg9[%c0_10, %c0_11] : memref<128x8xf32, #tpu.memory_space<vmem>>, vector<128x8xf32>
    %cst_12 = arith.constant dense<0.000000e+00> : vector<2x8xf32>
    %19 = tpu.matmul %17, %18, %cst_12 {dimension_numbers = #tpu.dot_dimension_numbers<[1], [0], [0], [1], [0, 0, 1, 1], [], []>} : vector<2x128xf32>, vector<128x8xf32>, vector<2x8xf32> -> vector<2x8xf32>
    %20 = vector.extract_strided_slice %19 {offsets = [0, 0], sizes = [1, 8], strides = [1, 1]} : vector<2x8xf32> to vector<1x8xf32>
    %cst_13 = arith.constant 5.120000e+02 : f32
    %21 = vector.broadcast %cst_13 : f32 to vector<1x8xf32>
    %22 = arith.divf %20, %21 : vector<1x8xf32>
    %23 = vector.extract_strided_slice %19 {offsets = [1, 0], sizes = [1, 8], strides = [1, 1]} : vector<2x8xf32> to vector<1x8xf32>
    %cst_14 = arith.constant 5.120000e+02 : f32
    %24 = vector.broadcast %cst_14 : f32 to vector<1x8xf32>
    %25 = arith.divf %23, %24 : vector<1x8xf32>
    %26 = arith.mulf %22, %22 : vector<1x8xf32>
    %27 = arith.subf %25, %26 : vector<1x8xf32>
    %c0_15 = arith.constant 0 : index
    %c0_16 = arith.constant 0 : index
    %c0_17 = arith.constant 0 : index
    %28 = vector.load %arg4[%c0_15, %c0_16, %c0_17] : memref<1x1x8xf32, #tpu.memory_space<vmem>>, vector<1x1x8xf32>
    %29 = vector.shape_cast %28 : vector<1x1x8xf32> to vector<1x8xf32>
    %cst_18 = arith.constant 9.99999974E-6 : f32
    %30 = vector.broadcast %cst_18 : f32 to vector<1x8xf32>
    %31 = arith.addf %27, %30 : vector<1x8xf32>
    %32 = math.rsqrt %31 : vector<1x8xf32>
    %33 = arith.mulf %29, %32 : vector<1x8xf32>
    %c0_19 = arith.constant 0 : index
    %c0_20 = arith.constant 0 : index
    %c0_21 = arith.constant 0 : index
    %34 = vector.load %arg5[%c0_19, %c0_20, %c0_21] : memref<1x1x8xf32, #tpu.memory_space<vmem>>, vector<1x1x8xf32>
    %35 = vector.shape_cast %34 : vector<1x1x8xf32> to vector<1x8xf32>
    %36 = arith.mulf %22, %33 : vector<1x8xf32>
    %37 = arith.subf %35, %36 : vector<1x8xf32>
    %38 = tpu.concatenate %33, %37 in 0 : vector<1x8xf32>, vector<1x8xf32> -> vector<2x8xf32>
    %c0_22 = arith.constant 0 : index
    %c0_23 = arith.constant 0 : index
    %39 = vector.load %arg10[%c0_22, %c0_23] : memref<8x128xf32, #tpu.memory_space<vmem>>, vector<8x128xf32>
    %cst_24 = arith.constant dense<0.000000e+00> : vector<2x128xf32>
    %40 = tpu.matmul %38, %39, %cst_24 {dimension_numbers = #tpu.dot_dimension_numbers<[1], [0], [0], [1], [0, 0, 1, 1], [], []>} : vector<2x8xf32>, vector<8x128xf32>, vector<2x128xf32> -> vector<2x128xf32>
    %41 = vector.extract_strided_slice %40 {offsets = [0, 0], sizes = [1, 128], strides = [1, 1]} : vector<2x128xf32> to vector<1x128xf32>
    %42 = vector.broadcast %41 : vector<1x128xf32> to vector<32x128xf32>
    %43 = arith.mulf %11, %42 : vector<32x128xf32>
    %44 = vector.extract_strided_slice %40 {offsets = [1, 0], sizes = [1, 128], strides = [1, 1]} : vector<2x128xf32> to vector<1x128xf32>
    %45 = vector.broadcast %44 : vector<1x128xf32> to vector<32x128xf32>
    %46 = arith.addf %43, %45 : vector<32x128xf32>
    %c0_25 = arith.constant 0 : index
    %c0_26 = arith.constant 0 : index
    %47 = vector.load %arg11[%c0_25, %c0_26] : memref<32x2xf32, #tpu.memory_space<vmem>>, vector<32x1xf32>
    %c1_i32 = arith.constant 1 : i32
    %48 = tpu.dynamic_rotate %46 by %c1_i32 dim 0 : vector<32x128xf32>, i32 -> vector<32x128xf32>
    %49 = vector.broadcast %47 : vector<32x1xf32> to vector<32x128xf32>
    %50 = arith.mulf %49, %48 : vector<32x128xf32>
    %c0_27 = arith.constant 0 : index
    %c1 = arith.constant 1 : index
    %51 = vector.load %arg11[%c0_27, %c1] : memref<32x2xf32, #tpu.memory_space<vmem>>, vector<32x1xf32>
    %c31_i32 = arith.constant 31 : i32
    %52 = tpu.dynamic_rotate %46 by %c31_i32 dim 0 : vector<32x128xf32>, i32 -> vector<32x128xf32>
    %53 = vector.broadcast %51 : vector<32x1xf32> to vector<32x128xf32>
    %54 = arith.mulf %53, %52 : vector<32x128xf32>
    %55 = tpu.concatenate %50, %46, %54 in 1 : vector<32x128xf32>, vector<32x128xf32>, vector<32x128xf32> -> vector<32x384xf32>
    %c0_28 = arith.constant 0 : index
    %c0_29 = arith.constant 0 : index
    %c0_30 = arith.constant 0 : index
    %56 = vector.load %arg6[%c0_28, %c0_29, %c0_30] : memref<1x384x128xf32, #tpu.memory_space<vmem>>, vector<1x384x128xf32>
    %57 = vector.shape_cast %56 : vector<1x384x128xf32> to vector<384x128xf32>
    %cst_31 = arith.constant dense<0.000000e+00> : vector<32x128xf32>
    %58 = tpu.matmul %55, %57, %cst_31 {dimension_numbers = #tpu.dot_dimension_numbers<[1], [0], [0], [1], [0, 0, 1, 1], [], []>} : vector<32x384xf32>, vector<384x128xf32>, vector<32x128xf32> -> vector<32x128xf32>
    %c0_32 = arith.constant 0 : index
    %c0_33 = arith.constant 0 : index
    %c0_34 = arith.constant 0 : index
    %59 = vector.load %arg7[%c0_32, %c0_33, %c0_34] : memref<1x1x128xf32, #tpu.memory_space<vmem>>, vector<1x1x128xf32>
    %60 = vector.shape_cast %59 : vector<1x1x128xf32> to vector<1x128xf32>
    %61 = vector.broadcast %60 : vector<1x128xf32> to vector<32x128xf32>
    %62 = arith.addf %58, %61 : vector<32x128xf32>
    %cst_35 = arith.constant 0.000000e+00 : f32
    %63 = vector.broadcast %cst_35 : f32 to vector<32x128xf32>
    %64 = arith.maximumf %62, %63 : vector<32x128xf32>
    %c0_36 = arith.constant 0 : index
    %c0_37 = arith.constant 0 : index
    %c0_38 = arith.constant 0 : index
    %65 = vector.load %arg8[%c0_36, %c0_37, %c0_38] : memref<1x32x128xf32, #tpu.memory_space<vmem>>, vector<1x32x128xf32>
    %66 = vector.shape_cast %65 : vector<1x32x128xf32> to vector<32x128xf32>
    %67 = arith.addf %64, %66 : vector<32x128xf32>
    %c0_39 = arith.constant 0 : index
    %c0_40 = arith.constant 0 : index
    %c0_41 = arith.constant 0 : index
    %68 = vector.load %arg12[%c0_39, %c0_40, %c0_41] : memref<1x32x128xf32, #tpu.memory_space<vmem>>, vector<1x32x128xf32>
    %69 = vector.shape_cast %68 : vector<1x32x128xf32> to vector<32x128xf32>
    %70 = vector.shape_cast %67 : vector<32x128xf32> to vector<1x32x128xf32>
    tpu.vector_store %arg12[%c0_39, %c0_40, %c0_41], %70 {strides = array<i32>} : memref<1x32x128xf32, #tpu.memory_space<vmem>>, vector<1x32x128xf32>,
    return
  }
  func.func @transform_0(%arg0: i32) -> (i32, i32, i32) {
    %c0_i32 = arith.constant 0 : i32
    %c0_i32_0 = arith.constant 0 : i32
    %c0_i32_1 = arith.constant 0 : i32
    return %arg0, %c0_i32, %c0_i32_0 : i32, i32, i32
  }
  func.func @transform_1(%arg0: i32) -> (i32, i32, i32) {
    %c0_i32 = arith.constant 0 : i32
    %c0_i32_0 = arith.constant 0 : i32
    %c0_i32_1 = arith.constant 0 : i32
    return %arg0, %c0_i32, %c0_i32_0 : i32, i32, i32
  }
  func.func @transform_2(%arg0: i32) -> (i32, i32, i32) {
    %c0_i32 = arith.constant 0 : i32
    %c0_i32_0 = arith.constant 0 : i32
    %c0_i32_1 = arith.constant 0 : i32
    return %arg0, %c0_i32, %c0_i32_0 : i32, i32, i32
  }
  func.func @transform_3(%arg0: i32) -> (i32, i32, i32) {
    %c0_i32 = arith.constant 0 : i32
    %c0_i32_0 = arith.constant 0 : i32
    %c0_i32_1 = arith.constant 0 : i32
    return %arg0, %c0_i32, %c0_i32_0 : i32, i32, i32
  }
  func.func @transform_4(%arg0: i32) -> (i32, i32, i32) {
    %c0_i32 = arith.constant 0 : i32
    %c0_i32_0 = arith.constant 0 : i32
    %c0_i32_1 = arith.constant 0 : i32
    return %arg0, %c0_i32, %c0_i32_0 : i32, i32, i32
  }
  func.func @transform_5(%arg0: i32) -> (i32, i32, i32) {
    %c0_i32 = arith.constant 0 : i32
    %c0_i32_0 = arith.constant 0 : i32
    %c0_i32_1 = arith.constant 0 : i32
    return %arg0, %c0_i32, %c0_i32_0 : i32, i32, i32
  }
  func.func @transform_6(%arg0: i32) -> (i32, i32, i32) {
    %c0_i32 = arith.constant 0 : i32
    %c0_i32_0 = arith.constant 0 : i32
    %c0_i32_1 = arith.constant 0 : i32
    return %arg0, %c0_i32, %c0_i32_0 : i32, i32, i32
  }
  func.func @transform_7(%arg0: i32) -> (i32, i32, i32) {
    %c0_i32 = arith.constant 0 : i32
    %c0_i32_0 = arith.constant 0 : i32
    %c0_i32_1 = arith.constant 0 : i32
    return %arg0, %c0_i32, %c0_i32_0 : i32, i32, i32
  }
  func.func @transform_8(%arg0: i32) -> (i32, i32) {
    %c0_i32 = arith.constant 0 : i32
    %c0_i32_0 = arith.constant 0 : i32
    %c0_i32_1 = arith.constant 0 : i32
    return %c0_i32, %c0_i32_0 : i32, i32
  }
  func.func @transform_9(%arg0: i32) -> (i32, i32) {
    %c0_i32 = arith.constant 0 : i32
    %c0_i32_0 = arith.constant 0 : i32
    %c0_i32_1 = arith.constant 0 : i32
    return %c0_i32, %c0_i32_0 : i32, i32
  }
  func.func @transform_10(%arg0: i32) -> (i32, i32) {
    %c0_i32 = arith.constant 0 : i32
    %c0_i32_0 = arith.constant 0 : i32
    %c0_i32_1 = arith.constant 0 : i32
    return %c0_i32, %c0_i32_0 : i32, i32
  }
  func.func @transform_11(%arg0: i32) -> (i32, i32, i32) {
    %c0_i32 = arith.constant 0 : i32
    %c0_i32_0 = arith.constant 0 : i32
    %c0_i32_1 = arith.constant 0 : i32
    return %arg0, %c0_i32, %c0_i32_0 : i32, i32, i32
  }
}

</mosaic_0001>

<bundles_post_ra>
// kernel: tile.10
= control target key start
LH: loop header
LB: loop body
LE: loop exit
PB: predicated region body
PF: predicated region fallthrough
CT: control target
= control target key end

     0   :  { %s28_s0 = inlined_call_operand.vmem [shape: f32[8], index: 0, kind: input, shape index: {}]   ;;  %s29_s1 = inlined_call_operand.vmem [shape: f32[16,8], index: 1, kind: output, shape index: {}]  }
   0x1   :  { %v4_v0 = vld [vmem:[%s28_s0] ss:$0 sm:$0xff] }
   0x2   :  { %5 = vst [vmem:[%s29_s1] sm:$0xff] %v4_v0  ;;  %8 = vst [vmem:[%s29_s1 + $0x8] sm:$0xff] %v4_v0 }

// kernel: tile.14
= control target key start
LH: loop header
LB: loop body
LE: loop exit
PB: predicated region body
PF: predicated region fallthrough
CT: control target
= control target key end

     0   :  { %s131_s10 = smov 120   ;;  %s132_s11 = smov 104   ;;  %vm3_vm0 = vcmask 64512   ;;  %vm9_vm1 = vcmask 1048512   ;;  %vm15_vm2 = vcmask 982912   ;;  %vm21_vm3 = vcmask 917312   ;;  %s207_s0 = inlined_call_operand.vmem [shape: f32[16,8], index: 0, kind: input, shape index: {}]   ;;  %s208_s1 = inlined_call_operand.vmem [shape: f32[1,128], index: 1, kind: output, shape index: {}]  }
   0x1   :  { %v101_v0 = vld [vmem:[%s207_s0 + $0xf] sm:$0x1]   ;;  %v103_v1 = vld [vmem:[%s207_s0 + $0xd] sm:$0x1]   ;;  %v102_v2 = vld [vmem:[%s207_s0 + $0xe] sm:$0x1]  }
   0x2   :  { %7 = vrot.lane.b32.xlu0 %v101_v0, %s131_s10  ;;  %19 = vrot.lane.b32.xlu1 %v103_v1, %s132_s11  ;;  %v104_v3 = vld [vmem:[%s207_s0 + $0xc] sm:$0x1]   ;;  %s133_s16 = smov 112   ;;  %s134_s17 = smov 96   ;;  %v105_v4 = vld [vmem:[%s207_s0 + $0xb] sm:$0x1]  }
   0x3   :  { %v106_v5 = vld [vmem:[%s207_s0 + $0xa] sm:$0x1]   ;;  %v2_v6 = vld [vmem:[%s207_s0] sm:$0x1]   ;;  %s135_s24 = smov 88   ;;  %s136_s25 = smov 80  }
   0x4   :  { %4 = vst.msk [vmem:[#allocation0] sm:$0x1] %vm3_vm0, %v2_v6   ;;  %v107_v7 = vld [vmem:[%s207_s0 + $0x9] sm:$0x1]   ;;  %v108_v8 = vld [vmem:[%s207_s0 + $0x8] sm:$0x1]  }
   0x5   :  { %s137_s30 = smov 72   ;;  %s138_s2 = smov 64   ;;  %v109_v9 = vld [vmem:[%s207_s0 + $0x7] sm:$0x1]   ;;  %v110_v10 = vld [vmem:[%s207_s0 + $0x6] sm:$0x1]  }
   0x6   :  { %13 = vrot.lane.b32.xlu0 %v102_v2, %s133_s16  ;;  %25 = vrot.lane.b32.xlu1 %v104_v3, %s134_s17  ;;  %s139_s7 = smov 56   ;;  %s140_s8 = smov 48   ;;  %v111_v11 = vld [vmem:[%s207_s0 + $0x5] sm:$0x1]   ;;  %v112_v12 = vld [vmem:[%s207_s0 + $0x4] sm:$0x1]  }
   0x7   :  { %s141_s13 = smov 40   ;;  %s142_s14 = smov 32   ;;  %v113_v13 = vld [vmem:[%s207_s0 + $0x3] sm:$0x1]   ;;  %v114_v14 = vld [vmem:[%s207_s0 + $0x2] sm:$0x1]  }
   0x8   :  { %s143_s19 = smov 24   ;;  %s144_s20 = smov 16   ;;  %v115_v15 = vld [vmem:[%s207_s0 + $0x1] sm:$0x1]   ;;  %vm27_vm4 = vcmask 851712   ;;  %vm33_vm5 = vcmask 786112  }
   0x9   :  { %s145_s0 = smov 8   ;;  %vm39_vm6 = vcmask 720512   ;;  %vm45_vm7 = vcmask 654912   ;;  %vm51_vm8 = vcmask 589312   ;;  %vm57_vm9 = vcmask 523712  }
   0xa   :  { %31 = vrot.lane.b32.xlu0 %v105_v4, %s135_s24  ;;  %37 = vrot.lane.b32.xlu1 %v106_v5, %s136_s25  ;;  %vm63_vm10 = vcmask 458112   ;;  %vm69_vm11 = vcmask 392512   ;;  %vm75_vm12 = vcmask 326912   ;;  %vm81_vm13 = vcmask 261312  }
   0xb   :  { %vm87_vm14 = vcmask 195712   ;;  %vm93_vm15 = vcmask 130112  }
   0xe   :  { %43 = vrot.lane.b32.xlu0 %v107_v7, %s137_s30  ;;  %49 = vrot.lane.b32.xlu1 %v108_v8, %s138_s2 }
  0x12   :  { %55 = vrot.lane.b32.xlu0 %v109_v9, %s139_s7  ;;  %61 = vrot.lane.b32.xlu1 %v110_v10, %s140_s8 }
  0x16   :  { %67 = vrot.lane.b32.xlu0 %v111_v11, %s141_s13  ;;  %73 = vrot.lane.b32.xlu1 %v112_v12, %s142_s14 }
  0x1a   :  { %79 = vrot.lane.b32.xlu0 %v113_v13, %s143_s19  ;;  %85 = vrot.lane.b32.xlu1 %v114_v14, %s144_s20 }
  0x1e   :  { %91 = vrot.lane.b32.xlu0 %v115_v15, %s145_s0 }
  0x74   :  { %v8_v16 = vpop.permute.xlu0 %7   ;;  %v20_v17 = vpop.permute.xlu1 %19  }
  0x75   :  { %10 = vst.msk [vmem:[#allocation0] sm:$0x1] %vm9_vm1, %v8_v16  }
  0x78   :  { %v14_v18 = vpop.permute.xlu0 %13   ;;  %v26_v19 = vpop.permute.xlu1 %25  }
  0x79   :  { %16 = vst.msk [vmem:[#allocation0] sm:$0x1] %vm15_vm2, %v14_v18  }
  0x7a   :  { %22 = vst.msk [vmem:[#allocation0] sm:$0x1] %vm21_vm3, %v20_v17  }
  0x7b   :  { %28 = vst.msk [vmem:[#allocation0] sm:$0x1] %vm27_vm4, %v26_v19  }
  0x7c   :  { %v32_v20 = vpop.permute.xlu0 %31   ;;  %v38_v21 = vpop.permute.xlu1 %37  }
  0x7d   :  { %34 = vst.msk [vmem:[#allocation0] sm:$0x1] %vm33_vm5, %v32_v20  }
  0x7e   :  { %40 = vst.msk [vmem:[#allocation0] sm:$0x1] %vm39_vm6, %v38_v21  }
  0x80   :  { %v44_v22 = vpop.permute.xlu0 %43   ;;  %v50_v23 = vpop.permute.xlu1 %49  }
  0x81   :  { %46 = vst.msk [vmem:[#allocation0] sm:$0x1] %vm45_vm7, %v44_v22  }
  0x82   :  { %52 = vst.msk [vmem:[#allocation0] sm:$0x1] %vm51_vm8, %v50_v23  }
  0x84   :  { %v56_v24 = vpop.permute.xlu0 %55   ;;  %v62_v25 = vpop.permute.xlu1 %61  }
  0x85   :  { %58 = vst.msk [vmem:[#allocation0] sm:$0x1] %vm57_vm9, %v56_v24  }
  0x86   :  { %64 = vst.msk [vmem:[#allocation0] sm:$0x1] %vm63_vm10, %v62_v25  }
  0x88   :  { %v68_v26 = vpop.permute.xlu0 %67   ;;  %v74_v27 = vpop.permute.xlu1 %73  }
  0x89   :  { %70 = vst.msk [vmem:[#allocation0] sm:$0x1] %vm69_vm11, %v68_v26  }
  0x8a   :  { %76 = vst.msk [vmem:[#allocation0] sm:$0x1] %vm75_vm12, %v74_v27  }
  0x8c   :  { %v80_v28 = vpop.permute.xlu0 %79   ;;  %v86_v29 = vpop.permute.xlu1 %85  }
  0x8d   :  { %82 = vst.msk [vmem:[#allocation0] sm:$0x1] %vm81_vm13, %v80_v28  }
  0x8e   :  { %88 = vst.msk [vmem:[#allocation0] sm:$0x1] %vm87_vm14, %v86_v29  }
  0x90   :  { %v92_v30 = vpop.permute.xlu0 %91  }
  0x91   :  { %94 = vst.msk [vmem:[#allocation0] sm:$0x1] %vm93_vm15, %v92_v30  }
  0x98   :  { %v98_v31 = vld [vmem:[#allocation0] sm:$0x1] }
  0x99   :  { %100 = vst [vmem:[%s208_s1] sm:$0x1] %v98_v31 }

// kernel: interleaved_layer_forward.1
= control target key start
LH: loop header
LB: loop body
LE: loop exit
PB: predicated region body
PF: predicated region fallthrough
CT: control target
= control target key end

     0   :  { %s1587_s17 = smov 0   ;;  %s1853_s0 = inlined_call_operand.vmem [shape: f32[2,1,1], index: 0, kind: input, shape index: {}]   ;;  %s1854_s1 = inlined_call_operand.vmem [shape: f32[2,32,128], index: 1, kind: input, shape index: {}]   ;;  %s1855_s2 = inlined_call_operand.vmem [shape: f32[2,32,128], index: 2, kind: input, shape index: {}]   ;;  %s1856_s3 = inlined_call_operand.vmem [shape: f32[2,1,8], index: 3, kind: input, shape index: {}]   ;;  %s1857_s4 = inlined_call_operand.vmem [shape: f32[2,1,8], index: 4, kind: input, shape index: {}]   ;;  %s1858_s5 = inlined_call_operand.vmem [shape: f32[2,384,128], index: 5, kind: input, shape index: {}]   ;;  %s1859_s6 = inlined_call_operand.vmem [shape: f32[2,1,128], index: 6, kind: input, shape index: {}]   ;;  %s1860_s7 = inlined_call_operand.vmem [shape: f32[2,32,128], index: 7, kind: input, shape index: {}, may-alias: {7,11}]   ;;  %s1861_s8 = inlined_call_operand.vmem [shape: f32[128,8], index: 8, kind: input, shape index: {}]   ;;  %s1862_s9 = inlined_call_operand.vmem [shape: f32[8,128], index: 9, kind: input, shape index: {}]   ;;  %s1863_s10 = inlined_call_operand.vmem [shape: f32[32,2], index: 10, kind: input, shape index: {}]   ;;  %s1864_s11 = inlined_call_operand.vmem [shape: f32[2,32,128], index: 11, kind: output, shape index: {}, may-alias: {7,11}]  }
   0x1 LB: > { %s1203_s18 = sadd.s32 4294967295, %s1519_s17   ;;  %p1207_p0 = scmp.ge.s32.totalorder %s1519_s17, 1  ;;  %s1519_s17 = sphi %s1587_s17, %s21_s17  }
   0x2   : > { %p399_p1 = scmp.lt.s32.totalorder %s1519_s17, 3 }
   0x4   : > { %p400_p2 = pnand %p1207_p0, %p399_p1 }
   0x5   : > { %p466_p3 = scmp.lt.s32.totalorder (!%p400_p2), %s1203_s18, 1  ;;  %v552_v0 = vld [vmem:[%s1861_s8] sm:$0xff] (!%p400_p2)  ;;  %v553_v1 = vld [vmem:[%s1861_s8 + $0x8] sm:$0xff] (!%p400_p2)  ;;  %v554_v2 = vld [vmem:[%s1861_s8 + $0x10] sm:$0xff] (!%p400_p2)  ;;  %v1521_v3 = vmov (!%p400_p2), 0.0|0.0   ;;  %vm1522_vm0 = vmmov (!%p400_p2), 0  }
   0x6   : > { %403 = sbr.rel (%p400_p2) target bundleno = 817 (0x331), region = 64  ;;  %1386 = vmatprep.subr.bf16.mxu0 (!%p400_p2), %v1521_v3  ;;  %v1387_v4 = vpack.c.bf16 (!%p400_p2), %v553_v1, %v552_v0  ;;  %v555_v5 = vld [vmem:[%s1861_s8 + $0x18] sm:$0xff] (!%p400_p2)  ;;  %v1523_v6 = vmov (!%p400_p2), 0.0   ;;  %v556_v8 = vld [vmem:[%s1861_s8 + $0x20] sm:$0xff] (!%p400_p2)  ;;  %v557_v9 = vld [vmem:[%s1861_s8 + $0x28] sm:$0xff] (!%p400_p2)  ;;  %vm550_vm1 = vcmask (!%p400_p2), 1040384  }
   0x7   : > { %1340 = vmatprep.mubr.msk.f32.mxu0 (!%p400_p2), %vm1522_vm0, %v1523_v6  ;;  %1343 = vmatprep.subr.mxu1 (!%p400_p2), %v1523_v6  ;;  %v1390_v7 = vpack.c.bf16 (!%p400_p2), %v555_v5, %v554_v2  ;;  %v1393_v11 = vpack.c.bf16 (!%p400_p2), %v557_v9, %v556_v8  ;;  %v558_v12 = vld [vmem:[%s1861_s8 + $0x30] sm:$0xff] (!%p400_p2)  ;;  %v559_v13 = vld [vmem:[%s1861_s8 + $0x38] sm:$0xff] (!%p400_p2)  ;;  %v560_v15 = vld [vmem:[%s1861_s8 + $0x40] sm:$0xff] (!%p400_p2)  ;;  %vm677_vm2 = vcmask (!%p400_p2), 64512  }
   0x8   : > { %1388 = vmatpush3.bf16.msra.mxu0 (!%p400_p2), %v1387_v4  ;;  %1345 = vmatprep.mubr.msk.f32.mxu1 (!%p400_p2), %vm1522_vm0, %v1523_v6  ;;  %v1396_v14 = vpack.c.bf16 (!%p400_p2), %v559_v13, %v558_v12  ;;  %v561_v16 = vld [vmem:[%s1861_s8 + $0x48] sm:$0xff] (!%p400_p2)  ;;  %v562_v18 = vld [vmem:[%s1861_s8 + $0x50] sm:$0xff] (!%p400_p2)  ;;  %v563_v19 = vld [vmem:[%s1861_s8 + $0x58] sm:$0xff] (!%p400_p2) }
   0x9   : > { %1389 = vmatprep.subr.bf16.mxu0 (!%p400_p2), %v1521_v3  ;;  %v1399_v17 = vpack.c.bf16 (!%p400_p2), %v561_v16, %v560_v15  ;;  %v1402_v20 = vpack.c.bf16 (!%p400_p2), %v563_v19, %v562_v18  ;;  %v564_v21 = vld [vmem:[%s1861_s8 + $0x60] sm:$0xff] (!%p400_p2)  ;;  %v565_v22 = vld [vmem:[%s1861_s8 + $0x68] sm:$0xff] (!%p400_p2)  ;;  %v566_v24 = vld [vmem:[%s1861_s8 + $0x70] sm:$0xff] (!%p400_p2) }
   0xa   : > { %v1405_v23 = vpack.c.bf16 (!%p400_p2), %v565_v22, %v564_v21  ;;  %v567_v25 = vld [vmem:[%s1861_s8 + $0x78] sm:$0xff] (!%p400_p2)  ;;  %v676_v8 = vld [vmem:[%s1862_s9] sm:$0xff] (!%p400_p2)  ;;  %v769_v9 = vld [vmem:[%s1863_s10 + $0x10] sm:$0xff] (!%p400_p2) }
   0xb   : > { %v1408_v26 = vpack.c.bf16 (!%p400_p2), %v567_v25, %v566_v24  ;;  %1344 = vmatpush3.msra.mxu1 (!%p400_p2), %v676_v8  ;;  %v770_v16 = vld [vmem:[%s1863_s10 + $0x18] sm:$0xff] (!%p400_p2)  ;;  %v1525_v25 = vmov (!%p400_p2), 1  }
   0xc   : > { %1391 = vmatpush3.bf16.msra.mxu0 (!%p400_p2), %v1390_v7 }
   0xd   : > { %s1866_s18 = smov (!%p466_p3, %s1203_s18), 1  ;;  %1392 = vmatprep.subr.bf16.mxu0 %v1521_v3 }
   0xe   : > { %s468_s29 = scalar_lea.vmem %s1853_s0, %s1866_s18  ;;  %s1650_s20 = sshll.u32 %s1866_s18, 5 }
   0xf   : > { %v503_v10 = vld [vmem:[%s468_s29] sm:$0x1]  ;;  %s473_s23 = scalar_lea.vmem %s1854_s1, %s1650_s20  ;;  %s478_s26 = scalar_lea.vmem %s1855_s2, %s1650_s20 }
  0x10   : > { %1491 = vpush %v503_v10  ;;  %1394 = vmatpush3.bf16.msra.mxu0 %v1393_v11  ;;  %v505_v27 = vld [vmem:[%s473_s23] sm:$0xff]  ;;  %v506_v28 = vld [vmem:[%s473_s23 + $0x8] sm:$0xff]  ;;  %v507_v29 = vld [vmem:[%s473_s23 + $0x10] sm:$0xff]  ;;  %s1490_s29 = smul.u32 384, %s1866_s18  ;;  %v1524_v11 = vmov 0   ;;  %s484_s13 = scalar_lea.vmem %s1857_s4, %s1866_s18 }
  0x11   : > { %1395 = vmatprep.subr.bf16.mxu0 %v1521_v3  ;;  %v515_v30 = vld [vmem:[%s478_s26] sm:$0xff]  ;;  %v516_v32 = vld [vmem:[%s478_s26 + $0x8] sm:$0xff]  ;;  %v517_v33 = vld [vmem:[%s478_s26 + $0x10] sm:$0xff]  ;;  %1508 = vset.pattern.permute.xlu1 %v1524_v11  ;;  %s492_s16 = scalar_lea.vmem %s1859_s6, %s1866_s18  ;;  %s497_s22 = scalar_lea.vmem %s1860_s7, %s1650_s20 }
  0x12   : > { %v518_v34 = vld [vmem:[%s478_s26 + $0x18] sm:$0xff]  ;;  %s1688_s15 = scalar_lea.vmem %s1858_s5, %s1490_s29  ;;  %v767_v10 = vld [vmem:[%s1863_s10] sm:$0xff]  ;;  %1507 = vset.pattern.permute.xlu0 %v1524_v11  ;;  %794 = vperm.xlu1 %1508, %v769_v9   ;;  %s481_s29 = scalar_lea.vmem %s1856_s3, %s1866_s18 }
  0x13   : > { %v508_v35 = vld [vmem:[%s473_s23 + $0x18] sm:$0xff]  ;;  %v851_v12 = vld [vmem:[%s1688_s15 + $0x80] sm:$0xff]  ;;  %v852_v13 = vld [vmem:[%s1688_s15 + $0x88] sm:$0xff]  ;;  %784 = vperm.xlu0 %1507, %v767_v10   ;;  %s502_s24 = scalar_lea.vmem %s1864_s11, %s1650_s20 }
  0x14   : > { %1397 = vmatpush3.bf16.msra.mxu0 %v1396_v14  ;;  %v1410_v14 = vpack.c.bf16 %v852_v13, %v851_v12  ;;  %v867_v15 = vld [vmem:[%s1688_s15 + $0x100] sm:$0xff]  ;;  %v868_v18 = vld [vmem:[%s1688_s15 + $0x108] sm:$0xff]  ;;  %v870_v21 = vld [vmem:[%s1688_s15 + $0x118] sm:$0xff] }
  0x15   : > { %1398 = vmatprep.subr.bf16.mxu0 %v1521_v3  ;;  %v1706_v19 = vpack.c.bf16 %v868_v18, %v867_v15  ;;  %v872_v24 = vld [vmem:[%s1688_s15 + $0x128] sm:$0xff]  ;;  %v857_v12 = vld [vmem:[%s1688_s15 + $0xb0] sm:$0xff]  ;;  %v858_v13 = vld [vmem:[%s1688_s15 + $0xb8] sm:$0xff] }
  0x16   : > { %1411 = vmatprep.subr.bf16.mxu1 %v1410_v14  ;;  %799 = vperm.xlu1 %1508, %v770_v16   ;;  %v840_v11 = vld [vmem:[%s1688_s15 + $0x28] sm:$0xff]  ;;  %v1422_v15 = vpack.c.bf16 %v858_v13, %v857_v12  ;;  %v859_v18 = vld [vmem:[%s1688_s15 + $0xc0] sm:$0xff] }
  0x18   : > { %1400 = vmatpush3.bf16.msra.mxu0 %v1399_v17  ;;  %v768_v17 = vld [vmem:[%s1863_s10 + $0x8] sm:$0xff] }
  0x19   : > { %1401 = vmatprep.subr.bf16.mxu0 %v1521_v3  ;;  %789 = vperm.xlu0 %1507, %v768_v17  }
  0x1a   : > { %1510 = vset.pattern.permute.xlu1 %v1525_v25 }
  0x1b   : > { %824 = vperm.xlu1 %1510, %v769_v9  }
  0x1c   : > { %1403 = vmatpush3.bf16.msra.mxu0 %v1402_v20  ;;  %v869_v20 = vld [vmem:[%s1688_s15 + $0x110] sm:$0xff] }
  0x1d   : > { %1404 = vmatprep.subr.bf16.mxu0 %v1521_v3  ;;  %v1710_v22 = vpack.c.bf16 %v870_v21, %v869_v20  ;;  %1509 = vset.pattern.permute.xlu0 %v1525_v25  ;;  %v860_v20 = vld [vmem:[%s1688_s15 + $0xc8] sm:$0xff] }
  0x1e   : > { %816 = vperm.xlu0 %1509, %v767_v10   ;;  %v839_v10 = vld [vmem:[%s1688_s15 + $0x20] sm:$0xff]  ;;  %v844_v25 = vld [vmem:[%s1688_s15 + $0x48] sm:$0xff] }
  0x1f   : > { %820 = vperm.xlu1 %1510, %v768_v17   ;;  %v1420_v14 = vpack.c.bf16 %v840_v11, %v839_v10  ;;  %v842_v17 = vld [vmem:[%s1688_s15 + $0x38] sm:$0xff] }
  0x20   : > { %1406 = vmatpush3.bf16.msra.mxu0 %v1405_v23  ;;  %v871_v23 = vld [vmem:[%s1688_s15 + $0x120] sm:$0xff] }
  0x21   : > { %1407 = vmatprep.subr.bf16.mxu0 %v1521_v3 }
  0x22   : > { %828 = vperm.xlu0 %1509, %v770_v16   ;;  %v841_v16 = vld [vmem:[%s1688_s15 + $0x30] sm:$0xff] }
  0x23   : > { %v1424_v21 = vpack.c.bf16 %v842_v17, %v841_v16 }
  0x24   : > { %1409 = vmatpush3.bf16.msra.mxu0 %v1408_v26  ;;  %v1717_v26 = vpack.c.bf16 %v872_v24, %v871_v23  ;;  %v1426_v23 = vpack.c.bf16 %v860_v20, %v859_v18  ;;  %v843_v24 = vld [vmem:[%s1688_s15 + $0x40] sm:$0xff] }
  0x25   : > { %1443 = vmatprep.subr.bf16.mxu0 %v1706_v19 }
  0x41   : > { %s1492_s27 = spop %1491 }
  0x42   : > { %v509_v31 = vstv %s1492_s27  ;;  %s514_s28 = ssub.f32 1.0, %s1492_s27 }
  0x43   : > { %v510_v36 = vmul.f32 %v509_v31, %v505_v27  ;;  %v511_v37 = vmul.f32 %v509_v31, %v506_v28  ;;  %v512_v38 = vmul.f32 %v509_v31, %v507_v29  ;;  %v513_v44 = vmul.f32 %v509_v31, %v508_v35  ;;  %v873_v27 = vld [vmem:[%s1688_s15 + $0x130] sm:$0xff]  ;;  %v874_v28 = vld [vmem:[%s1688_s15 + $0x138] sm:$0xff]  ;;  %v876_v31 = vld [vmem:[%s1688_s15 + $0x148] sm:$0xff] }
  0x44   : > { %v519_v39 = vstv %s514_s28  ;;  %v1723_v29 = vpack.c.bf16 %v874_v28, %v873_v27  ;;  %v861_v27 = vld [vmem:[%s1688_s15 + $0xd0] sm:$0xff]  ;;  %v862_v28 = vld [vmem:[%s1688_s15 + $0xd8] sm:$0xff] }
  0x45   : > { %v520_v40 = vmul.f32 %v519_v39, %v515_v30  ;;  %v521_v41 = vmul.f32 %v519_v39, %v516_v32  ;;  %v522_v42 = vmul.f32 %v519_v39, %v517_v33  ;;  %v523_v43 = vmul.f32 %v519_v39, %v518_v34  ;;  %v875_v30 = vld [vmem:[%s1688_s15 + $0x140] sm:$0xff] }
  0x46   : > { %v1729_v32 = vpack.c.bf16 %v876_v31, %v875_v30  ;;  %v1428_v30 = vpack.c.bf16 %v844_v25, %v843_v24  ;;  %v1430_v31 = vpack.c.bf16 %v862_v28, %v861_v27 }
  0x47   : > { %v1660_v45 = vadd.f32 %v520_v40, %v510_v36  ;;  %v1662_v46 = vadd.f32 %v521_v41, %v511_v37  ;;  %v1664_v47 = vadd.f32 %v522_v42, %v512_v38  ;;  %v1666_v48 = vadd.f32 %v523_v43, %v513_v44 }
  0x48   : > { %v1526_v40 = vmov 1966171168   ;;  %v652_v42 = vlaneseq }
  0x49   : > { %v528_v49 = vadd.f32 %v1662_v46, %v1660_v45  ;;  %v537_v50 = vmul.f32 %v1660_v45, %v1660_v45  ;;  %v538_v51 = vmul.f32 %v1662_v46, %v1662_v46  ;;  %v539_v53 = vmul.f32 %v1664_v47, %v1664_v47 }
  0x4a   : > { %v540_v56 = vmul.f32 %v1666_v48, %v1666_v48  ;;  %v650_v41 = vunpack.c.l.s4 %v1526_v40  ;;  %v1734_v44 = vshrl.u32 %v652_v42, 7  ;;  %v864_v40 = vld [vmem:[%s1688_s15 + $0xe8] sm:$0xff]  ;;  %v847_v42 = vld [vmem:[%s1688_s15 + $0x60] sm:$0xff] }
  0x4b   : > { %v529_v52 = vadd.f32 %v528_v49, %v1664_v47  ;;  %v541_v54 = vadd.f32 %v538_v51, %v537_v50 }
  0x4c   : > { %v651_v43 = vunpack.c.0.s8 %v650_v41  ;;  %vm777_vm3 = vcmp.lt.s32.totalorder %v1734_v44, 1  ;;  %vm810_vm4 = vcmp.lt.s32.totalorder %v1734_v44, 7 }
  0x4d   : > { %v530_v55 = vadd.f32 %v529_v52, %v1666_v48  ;;  %v542_v57 = vadd.f32 %v541_v54, %v539_v53  ;;  %v645_v53 = vld [vmem:[%s481_s29] sm:$0x1] }
  0x4e   : > { %v654_v49 = vsub.s32 %v651_v43, %v1734_v44  ;;  %v848_v43 = vld [vmem:[%s1688_s15 + $0x68] sm:$0xff] }
  0x4f   : > { %v531_v58 = vrot.slane %v530_v55, 4  ;;  %v543_v59 = vadd.f32 %v542_v57, %v540_v56  ;;  %v666_v56 = vld [vmem:[%s484_s13] sm:$0x1] }
  0x51   : > { %v532_v60 = vadd.f32 %v531_v58, %v530_v55  ;;  %v544_v61 = vrot.slane %v543_v59, 4  ;;  %v672_v58 = vsub.s32 0, %v1734_v44 }
  0x53   : > { %v533_v62 = vrot.slane %v532_v60, 2  ;;  %v545_v63 = vadd.f32 %v544_v61, %v543_v59  ;;  %v835_v59 = vld [vmem:[%s1688_s15] sm:$0xff] }
  0x55   : > { %v534_v0 = vadd.f32 %v533_v62, %v532_v60  ;;  %v546_v1 = vrot.slane %v545_v63, 2  ;;  %v836_v60 = vld [vmem:[%s1688_s15 + $0x8] sm:$0xff]  ;;  %v853_v62 = vld [vmem:[%s1688_s15 + $0x90] sm:$0xff] }
  0x57   : > { %v535_v2 = vrot.slane %v534_v0, 1  ;;  %v547_v3 = vadd.f32 %v546_v1, %v545_v63  ;;  %v854_v63 = vld [vmem:[%s1688_s15 + $0x98] sm:$0xff]  ;;  %v1412_v1 = vpack.c.bf16 %v836_v60, %v835_v59  ;;  %v881_v60 = vld [vmem:[%s1688_s15 + $0x170] sm:$0xff] }
  0x59   : > { %v548_v4 = vrot.slane %v547_v3, 1  ;;  %v536_v5 = vadd.f32 %v535_v2, %v534_v0  ;;  %v1414_v2 = vpack.c.bf16 %v854_v63, %v853_v62 }
  0x5b   : > { %v549_v6 = vadd.f32 %v548_v4, %v547_v3  ;;  %v837_v3 = vld [vmem:[%s1688_s15 + $0x10] sm:$0xff]  ;;  %v838_v4 = vld [vmem:[%s1688_s15 + $0x18] sm:$0xff] }
  0x5c   : > { %v1416_v8 = vpack.c.bf16 %v838_v4, %v837_v3 }
  0x5d   : > { %v551_v7 = vsel %vm550_vm1, %v536_v5, %v549_v6  ;;  %v855_v6 = vld [vmem:[%s1688_s15 + $0xa0] sm:$0xff] }
  0x5e   : > { %1341 = vmatmul.mubr.f32.vlgmr.msra.gmra.mrb[0].mxu0 %v551_v7  ;;  %v856_v7 = vld [vmem:[%s1688_s15 + $0xa8] sm:$0xff] }
  0x5f   : > { %1445 = vmatpush3.bf16.msra.mxu0 %v1706_v19  ;;  %v1418_v9 = vpack.c.bf16 %v856_v7, %v855_v6 }
  0x60   : > { %1447 = vmatprep.subr.bf16.mxu0 %v1710_v22 }
  0x63   : > { %1449 = vmatpush3.bf16.msra.mxu0 %v1710_v22 }
  0x64   : > { %1451 = vmatprep.subr.bf16.mxu0 %v1717_v26 }
  0x67   : > { %1453 = vmatpush3.bf16.msra.mxu0 %v1717_v26 }
  0x68   : > { %1455 = vmatprep.subr.bf16.mxu0 %v1723_v29 }
  0x6b   : > { %1457 = vmatpush3.bf16.msra.mxu0 %v1723_v29 }
  0x6c   : > { %1459 = vmatprep.subr.bf16.mxu0 %v1729_v32 }
  0x6f   : > { %1461 = vmatpush3.bf16.msra.mxu0 %v1729_v32 }
  0x91   : > { %v795_v63 = vpop.permute.xlu1 %794 }
 0x131   : > { %v634_v33 = vpop.f32.mrb[0].mxu0 }
 0x132   : > { %v639_v34 = vmul.f32 0.001953125, %v634_v33  ;;  %v1342_v35 = vpop.f32.mrb[1].mxu0  ;;  %v845_v33 = vld [vmem:[%s1688_s15 + $0x50] sm:$0xff] }
 0x134   : > { %v640_v36 = vmul.f32 %v639_v34, %v639_v34 }
 0x136   : > { %v642_v37 = vrot.slane %v640_v36, 7  ;;  %v877_v36 = vld [vmem:[%s1688_s15 + $0x150] sm:$0xff] }
 0x138   : > { %v644_v38 = vsub.f32 %v639_v34, %v642_v37  ;;  %v878_v37 = vld [vmem:[%s1688_s15 + $0x158] sm:$0xff] }
 0x13a   : > { %v646_v39 = vadd.f32 1e-05, %v644_v38  ;;  %v1773_v38 = vpack.c.bf16 %v878_v37, %v877_v36 }
 0x13c   : > { %1511 = vrsqrt.f32 %v646_v39  ;;  %v863_v39 = vld [vmem:[%s1688_s15 + $0xe0] sm:$0xff]  ;;  %1463 = vmatprep.subr.bf16.mxu0 %v1773_v38 }
 0x13d   : > { %v1434_v41 = vpack.c.bf16 %v864_v40, %v863_v39  ;;  %1465 = vmatpush3.bf16.msra.mxu0 %v1773_v38 }
 0x146   : > { %v1512_v50 = vpop.eup %1511 }
 0x147   : > { %v655_v51 = vrot.slane %v1512_v50, %v654_v49  ;;  %v879_v50 = vld [vmem:[%s1688_s15 + $0x160] sm:$0xff] }
 0x149   : > { %v656_v52 = vcombine.high %v655_v51, %v655_v51  ;;  %v880_v51 = vld [vmem:[%s1688_s15 + $0x168] sm:$0xff] }
 0x14b   : > { %v663_v54 = vrot.slane %v656_v52, %v654_v49  ;;  %v1436_v49 = vpack.c.bf16 %v848_v43, %v847_v42  ;;  %v1783_v52 = vpack.c.bf16 %v880_v51, %v879_v50  ;;  %v1218_v42 = vld [vmem:[%s492_s16] ss:$0 sm:$0xff] }
 0x14d   : > { %v665_v55 = vmul.f32 %v663_v54, %v645_v53  ;;  %v865_v53 = vld [vmem:[%s1688_s15 + $0xf0] sm:$0xff]  ;;  %v866_v54 = vld [vmem:[%s1688_s15 + $0xf8] sm:$0xff]  ;;  %1467 = vmatprep.subr.bf16.mxu0 %v1783_v52 }
 0x14e   : > { %1469 = vmatpush3.bf16.msra.mxu0 %v1783_v52 }
 0x14f   : > { %v667_v57 = vmul.f32 %v665_v55, %v639_v34  ;;  %v846_v34 = vld [vmem:[%s1688_s15 + $0x58] sm:$0xff] }
 0x150   : > { %v1432_v35 = vpack.c.bf16 %v846_v34, %v845_v33 }
 0x151   : > { %v668_v61 = vsub.f32 %v666_v56, %v667_v57  ;;  %v849_v56 = vld [vmem:[%s1688_s15 + $0x70] sm:$0xff]  ;;  %v850_v57 = vld [vmem:[%s1688_s15 + $0x78] sm:$0xff] }
 0x152   : > { %v1440_v59 = vpack.c.bf16 %v850_v57, %v849_v56 }
 0x153   : > { %v673_v0 = vrot.slane %v668_v61, %v672_v58  ;;  %v882_v61 = vld [vmem:[%s1688_s15 + $0x178] sm:$0xff] }
 0x154   : > { %v1793_v62 = vpack.c.bf16 %v882_v61, %v881_v60  ;;  %v1067_v61 = vld [vmem:[%s497_s22 + $0x18] sm:$0xff] }
 0x155   : > { %v675_v5 = vsel %vm550_vm1, %v665_v55, %v673_v0  ;;  %v1438_v55 = vpack.c.bf16 %v866_v54, %v865_v53  ;;  %v800_v0 = vpop.permute.xlu1 %799  ;;  %v1064_v54 = vld [vmem:[%s497_s22] sm:$0xff] }
 0x156   : > { %1346 = vmatmul.mubr.msk.f32.vlgmr.msra.gmra.mrb[0].mxu1 %vm677_vm2, %v675_v5  ;;  %1471 = vmatprep.subr.bf16.mxu0 %v1793_v62 }
 0x157   : > { %1413 = vmatpush3.bf16.msra.mxu1 %v1412_v1  ;;  %1473 = vmatpush3.bf16.msra.mxu0 %v1793_v62  ;;  %v785_v1 = vpop.permute.xlu0 %784 }
 0x158   : > { %1415 = vmatprep.subr.bf16.mxu1 %v1414_v2  ;;  %v761_v2 = vsub.s32 1, %v1734_v44 }
 0x159   : > { %v825_v11 = vpop.permute.xlu1 %824 }
 0x15b   : > { %1417 = vmatpush3.bf16.msra.mxu1 %v1416_v8  ;;  %v790_v12 = vpop.permute.xlu0 %789 }
 0x15c   : > { %1419 = vmatprep.subr.bf16.mxu1 %v1418_v9 }
 0x15f   : > { %1421 = vmatpush3.bf16.msra.mxu1 %v1420_v14 }
 0x160   : > { %1423 = vmatprep.subr.bf16.mxu1 %v1422_v15 }
 0x163   : > { %1425 = vmatpush3.bf16.msra.mxu1 %v1424_v21  ;;  %v817_v21 = vpop.permute.xlu0 %816 }
 0x164   : > { %1427 = vmatprep.subr.bf16.mxu1 %v1426_v23 }
 0x167   : > { %1429 = vmatpush3.bf16.msra.mxu1 %v1428_v30 }
 0x168   : > { %1431 = vmatprep.subr.bf16.mxu1 %v1430_v31 }
 0x16b   : > { %1433 = vmatpush3.bf16.msra.mxu1 %v1432_v35 }
 0x16c   : > { %1435 = vmatprep.subr.bf16.mxu1 %v1434_v41 }
 0x16f   : > { %1437 = vmatpush3.bf16.msra.mxu1 %v1436_v49 }
 0x170   : > { %1439 = vmatprep.subr.bf16.mxu1 %v1438_v55 }
 0x173   : > { %1441 = vmatpush3.bf16.msra.mxu1 %v1440_v59  ;;  %v1065_v59 = vld [vmem:[%s497_s22 + $0x8] sm:$0xff] }
 0x174   : > { %1474 = vmatprep.subr.bf16.mxu1 %v1706_v19 }
 0x229   : > { %v747_v3 = vpop.f32.mrb[0].mxu1 }
 0x22a   : > { %v754_v4 = vrot.slane %v747_v3, %v672_v58  ;;  %v1347_v5 = vpop.f32.mrb[1].mxu1  ;;  %v762_v6 = vrot.slane %v747_v3, %v761_v2 }
 0x22c   : > { %v755_v7 = vmul.f32 %v754_v4, %v1660_v45  ;;  %v756_v8 = vmul.f32 %v754_v4, %v1662_v46  ;;  %v757_v9 = vmul.f32 %v754_v4, %v1664_v47  ;;  %v758_v10 = vmul.f32 %v754_v4, %v1666_v48  ;;  %v821_v47 = vpop.permute.xlu1 %820 }
 0x22e   : > { %v763_v13 = vadd.f32 %v762_v6, %v755_v7  ;;  %v764_v14 = vadd.f32 %v762_v6, %v756_v8  ;;  %v765_v15 = vadd.f32 %v762_v6, %v757_v9  ;;  %v766_v16 = vadd.f32 %v762_v6, %v758_v10 }
 0x230   : > { %v774_v17 = vrot.slane %v766_v16, 7  ;;  %v771_v58 = vrot.slane %v763_v13, 7  ;;  %954 = vmatprep.mubr.f32.mxu1 %v763_v13  ;;  %v808_v45 = vrot.slane %v765_v15, 1  ;;  %v806_v18 = vrot.slane %v763_v13, 1 }
 0x231   : > { %v807_v46 = vrot.slane %v764_v14, 1  ;;  %v772_v20 = vrot.slane %v764_v14, 7  ;;  %v773_v30 = vrot.slane %v765_v15, 7  ;;  %v809_v35 = vrot.slane %v766_v16, 1 }
 0x232   : > { %v781_v48 = vsel %vm777_vm3, %v774_v17, %v771_v58 }
 0x233   : > { %v813_v23 = vsel %vm810_vm4, %v806_v18, %v807_v46  ;;  %v812_v25 = vsel %vm810_vm4, %v807_v46, %v808_v45  ;;  %v802_v28 = vmul.f32 %v785_v1, %v781_v48  ;;  %v780_v31 = vsel %vm777_vm3, %v771_v58, %v772_v20 }
 0x234   : > { %v831_v24 = vmul.f32 %v817_v21, %v813_v23  ;;  %v832_v27 = vmul.f32 %v821_v47, %v812_v25  ;;  %v803_v33 = vmul.f32 %v790_v12, %v780_v31  ;;  %v779_v34 = vsel %vm777_vm3, %v772_v20, %v773_v30 }
 0x235   : > { %955 = vmatmul.mubr.f32.vlgmr.msra.gmra.mrb[2].mxu1 %v802_v28  ;;  %v804_v36 = vmul.f32 %v795_v63, %v779_v34  ;;  %v778_v37 = vsel %vm777_vm3, %v773_v30, %v774_v17 }
 0x236   : > { %1380 = vmatprep.mubr.f32.mxu0 %v831_v24  ;;  %1482 = vmatpush3.bf16.msra.mxu1 %v1706_v19  ;;  %v811_v19 = vsel %vm810_vm4, %v808_v45, %v809_v35  ;;  %v805_v39 = vmul.f32 %v800_v0, %v778_v37 }
 0x237   : > { %1381 = vmatmul.mubr.f32.vlgmr.msra.gmra.mrb[2].mxu0 %v832_v27  ;;  %959 = vmatprep.mubr.f32.mxu1 %v764_v14  ;;  %v833_v40 = vmul.f32 %v825_v11, %v811_v19 }
 0x238   : > { %1475 = vmatprep.subr.bf16.mxu1 %v1710_v22 }
 0x239   : > { %960 = vmatmul.mubr.f32.gmra.mrb[4].mxu1 %v803_v33 }
 0x23a   : > { %1483 = vmatpush3.bf16.msra.mxu1 %v1710_v22  ;;  %964 = vmatprep.mubr.f32.mxu1 %v765_v15  ;;  %v829_v22 = vpop.permute.xlu0 %828 }
 0x23b   : > { %1476 = vmatprep.subr.bf16.mxu1 %v1717_v26 }
 0x23d   : > { %965 = vmatmul.mubr.f32.gmra.mrb[6].mxu1 %v804_v36 }
 0x23e   : > { %1484 = vmatpush3.bf16.msra.mxu1 %v1717_v26  ;;  %969 = vmatprep.mubr.f32.mxu1 %v766_v16  ;;  %v814_v26 = vsel %vm810_vm4, %v809_v35, %v806_v18 }
 0x23f   : > { %1477 = vmatprep.subr.bf16.mxu1 %v1723_v29 }
 0x241   : > { %970 = vmatmul.mubr.f32.gmra.mrb[8].mxu1 %v805_v39 }
 0x242   : > { %1485 = vmatpush3.bf16.msra.mxu1 %v1723_v29  ;;  %1383 = vmatprep.mubr.f32.mxu1 %v833_v40  ;;  %v834_v29 = vmul.f32 %v829_v22, %v814_v26 }
 0x243   : > { %1478 = vmatprep.subr.bf16.mxu1 %v1729_v32 }
 0x246   : > { %1486 = vmatpush3.bf16.msra.mxu1 %v1729_v32 }
 0x247   : > { %1479 = vmatprep.subr.bf16.mxu1 %v1773_v38 }
 0x24a   : > { %1487 = vmatpush3.bf16.msra.mxu1 %v1773_v38 }
 0x24b   : > { %1480 = vmatprep.subr.bf16.mxu1 %v1783_v52 }
 0x24e   : > { %1488 = vmatpush3.bf16.msra.mxu1 %v1783_v52 }
 0x24f   : > { %1481 = vmatprep.subr.bf16.mxu1 %v1793_v62 }
 0x252   : > { %1489 = vmatpush3.bf16.msra.mxu1 %v1793_v62  ;;  %v1066_v62 = vld [vmem:[%s497_s22 + $0x10] sm:$0xff] }
 0x255   : > { %1384 = vmatmul.mubr.f32.vlgmr.msra.gmra.mrb[10].mxu1 %v834_v29 }
 0x308   : > { %v1276_v32 = vpop.f32.mrb[2].mxu1 }
 0x309   : > { %v1277_v41 = vpop.f32.mrb[3].mxu1 }
 0x30a   : > { %v1382_v38 = vpop.f32.mrb[2].mxu0  ;;  %v1278_v49 = vadd.f32 %v1277_v41, %v1276_v32 }
 0x30b   : > { %v1041_v43 = vpop.f32.mrb[3].mxu0 }
 0x30c   : > { %v957_v44 = vadd.f32 %v1278_v49, %v1218_v42  ;;  %v1279_v50 = vpop.f32.mrb[4].mxu1 }
 0x30d   : > { %v1280_v51 = vpop.f32.mrb[5].mxu1 }
 0x30e   : > { %v1042_v52 = vadd.f32 %v1041_v43, %v957_v44  ;;  %v1281_v53 = vadd.f32 %v1280_v51, %v1279_v50 }
 0x310   : > { %v1060_v55 = vmax.f32 %v1042_v52, 0.0  ;;  %v962_v56 = vadd.f32 %v1281_v53, %v1218_v42  ;;  %v1282_v57 = vpop.f32.mrb[6].mxu1 }
 0x311   : > { %v1283_v60 = vpop.f32.mrb[7].mxu1 }
 0x312   : > { %v1068_v63 = vadd.f32 %v1064_v54, %v1060_v55  ;;  %v1047_v0 = vadd.f32 %v1382_v38, %v962_v56  ;;  %v1284_v1 = vadd.f32 %v1283_v60, %v1282_v57 }
 0x314   : > { %v1061_v2 = vmax.f32 %v1047_v0, 0.0  ;;  %v1285_v3 = vpop.f32.mrb[8].mxu1  ;;  %1072 = vst [vmem:[%s502_s24] sm:$0xff] %v1068_v63  ;;  %v967_v9 = vadd.f32 %v1284_v1, %v1218_v42 }
 0x315   : > { %v1286_v4 = vpop.f32.mrb[9].mxu1 }
 0x316   : > { %v1069_v5 = vadd.f32 %v1065_v59, %v1061_v2  ;;  %v1287_v6 = vadd.f32 %v1286_v4, %v1285_v3 }
 0x318   : > { %1073 = vst [vmem:[%s502_s24 + $0x8] sm:$0xff] %v1069_v5  ;;  %v972_v7 = vadd.f32 %v1287_v6, %v1218_v42 }
 0x328   : > { %v1385_v8 = vpop.f32.mrb[10].mxu1 }
 0x329   : > { %v1057_v10 = vadd.f32 %v1385_v8, %v972_v7  ;;  %v1051_v11 = vpop.f32.mrb[11].mxu1 }
 0x32a   : > { %v1052_v12 = vadd.f32 %v1051_v11, %v967_v9 }
 0x32b   : > { %v1063_v13 = vmax.f32 %v1057_v10, 0.0 }
 0x32c   : > { %v1062_v14 = vmax.f32 %v1052_v12, 0.0 }
 0x32d   : > { %v1071_v15 = vadd.f32 %v1067_v61, %v1063_v13 }
 0x32e   : > { %v1070_v16 = vadd.f32 %v1066_v62, %v1062_v14 }
 0x32f   : > { %1075 = vst [vmem:[%s502_s24 + $0x18] sm:$0xff] %v1071_v15 }
 0x330   : > { %1074 = vst [vmem:[%s502_s24 + $0x10] sm:$0xff] %v1070_v16 }
 0x331 PF: > { %s21_s17 = sadd.s32 1, %s1519_s17  }
 0x332   : > { %p18_p4 = scmp.ge.s32.totalorder %s21_s17, 4  }
 0x334   :  { %20 = sbr.rel (!%p18_p4) target bundleno = 1 (0x1), region = 115 }

// kernel: squeeze.10
= control target key start
LH: loop header
LB: loop body
LE: loop exit
PB: predicated region body
PF: predicated region fallthrough
CT: control target
= control target key end

     0   :  { %vm3_vm0 = vcmask 130048   ;;  %s1305_s12 = smov 112   ;;  %s1828_s0 = inlined_call_operand.vmem [shape: f32[1,32,128], index: 0, kind: input, shape index: {}]   ;;  %s1829_s1 = inlined_call_operand.vmem [shape: f32[2,16,16,8], index: 1, kind: output, shape index: {}]  }
   0x1   :  { %v1163_v0 = vld [vmem:[%s1828_s0 + $0x10] sm:$0xff]   ;;  %v111_v1 = vld [vmem:[%s1828_s0] sm:$0xff]   ;;  %v1164_v2 = vld [vmem:[%s1828_s0 + $0x18] sm:$0xff]  }
   0x2   :  { %130 = vrot.lane.b32.xlu1 %v1163_v0, %s1305_s12  ;;  %112 = vrot.lane.b32.xlu0 %v111_v1, %s1305_s12  ;;  %v1162_v3 = vld [vmem:[%s1828_s0 + $0x8] sm:$0xff]   ;;  %17 = vst.msk [vmem:[#allocation0 + $0x80] ss:$8 sm:$0xf] %vm3_vm0, %v1163_v0   ;;  %v1165_v5 = vld [vmem:[%s1828_s0 + $0x20] sm:$0xff]  }
   0x3   :  { %v1166_v4 = vld [vmem:[%s1828_s0 + $0x28] sm:$0xff]   ;;  %19 = vst.msk [vmem:[#allocation0 + $0x80] ss:$8 sm:$0xf0] %vm3_vm0, %v1163_v0   ;;  %v1168_v6 = vld [vmem:[%s1828_s0 + $0x38] sm:$0xff]   ;;  %v1167_v7 = vld [vmem:[%s1828_s0 + $0x30] sm:$0xff]  }
   0x4   :  { %4 = vst.msk [vmem:[#allocation0] ss:$8 sm:$0xf] %vm3_vm0, %v111_v1   ;;  %5 = vst.msk [vmem:[#allocation0] ss:$8 sm:$0xf0] %vm3_vm0, %v111_v1  }
   0x5   :  { %24 = vst.msk [vmem:[#allocation0 + $0xc0] ss:$8 sm:$0xf] %vm3_vm0, %v1164_v2   ;;  %26 = vst.msk [vmem:[#allocation0 + $0xc0] ss:$8 sm:$0xf0] %vm3_vm0, %v1164_v2  }
   0x6   :  { %10 = vst.msk [vmem:[#allocation0 + $0x40] ss:$8 sm:$0xf] %vm3_vm0, %v1162_v3   ;;  %12 = vst.msk [vmem:[#allocation0 + $0x40] ss:$8 sm:$0xf0] %vm3_vm0, %v1162_v3   ;;  %139 = vrot.lane.b32.xlu1 %v1164_v2, %s1305_s12  ;;  %121 = vrot.lane.b32.xlu0 %v1162_v3, %s1305_s12 }
   0x7   :  { %38 = vst.msk [vmem:[#allocation0 + $0x140] ss:$8 sm:$0xf] %vm3_vm0, %v1166_v4   ;;  %40 = vst.msk [vmem:[#allocation0 + $0x140] ss:$8 sm:$0xf0] %vm3_vm0, %v1166_v4  }
   0x8   :  { %v1170_v8 = vld [vmem:[%s1828_s0 + $0x48] sm:$0xff]   ;;  %v1169_v9 = vld [vmem:[%s1828_s0 + $0x40] sm:$0xff]   ;;  %v1172_v10 = vld [vmem:[%s1828_s0 + $0x58] sm:$0xff]   ;;  %31 = vst.msk [vmem:[#allocation0 + $0x100] ss:$8 sm:$0xf] %vm3_vm0, %v1165_v5  }
   0x9   :  { %33 = vst.msk [vmem:[#allocation0 + $0x100] ss:$8 sm:$0xf0] %vm3_vm0, %v1165_v5   ;;  %52 = vst.msk [vmem:[#allocation0 + $0x1c0] ss:$8 sm:$0xf] %vm3_vm0, %v1168_v6  }
   0xa   :  { %54 = vst.msk [vmem:[#allocation0 + $0x1c0] ss:$8 sm:$0xf0] %vm3_vm0, %v1168_v6   ;;  %45 = vst.msk [vmem:[#allocation0 + $0x180] ss:$8 sm:$0xf] %vm3_vm0, %v1167_v7   ;;  %157 = vrot.lane.b32.xlu1 %v1166_v4, %s1305_s12  ;;  %148 = vrot.lane.b32.xlu0 %v1165_v5, %s1305_s12 }
   0xb   :  { %47 = vst.msk [vmem:[#allocation0 + $0x180] ss:$8 sm:$0xf0] %vm3_vm0, %v1167_v7   ;;  %v1171_v11 = vld [vmem:[%s1828_s0 + $0x50] sm:$0xff]   ;;  %v1174_v12 = vld [vmem:[%s1828_s0 + $0x68] sm:$0xff]   ;;  %v1173_v13 = vld [vmem:[%s1828_s0 + $0x60] sm:$0xff]  }
   0xc   :  { %66 = vst.msk [vmem:[#allocation0 + $0x240] ss:$8 sm:$0xf] %vm3_vm0, %v1170_v8   ;;  %68 = vst.msk [vmem:[#allocation0 + $0x240] ss:$8 sm:$0xf0] %vm3_vm0, %v1170_v8  }
   0xd   :  { %59 = vst.msk [vmem:[#allocation0 + $0x200] ss:$8 sm:$0xf] %vm3_vm0, %v1169_v9   ;;  %61 = vst.msk [vmem:[#allocation0 + $0x200] ss:$8 sm:$0xf0] %vm3_vm0, %v1169_v9  }
   0xe   :  { %80 = vst.msk [vmem:[#allocation0 + $0x2c0] ss:$8 sm:$0xf] %vm3_vm0, %v1172_v10   ;;  %82 = vst.msk [vmem:[#allocation0 + $0x2c0] ss:$8 sm:$0xf0] %vm3_vm0, %v1172_v10   ;;  %175 = vrot.lane.b32.xlu1 %v1168_v6, %s1305_s12  ;;  %166 = vrot.lane.b32.xlu0 %v1167_v7, %s1305_s12 }
   0xf   :  { %v1176_v14 = vld [vmem:[%s1828_s0 + $0x78] sm:$0xff]   ;;  %v1175_v15 = vld [vmem:[%s1828_s0 + $0x70] sm:$0xff]   ;;  %73 = vst.msk [vmem:[#allocation0 + $0x280] ss:$8 sm:$0xf] %vm3_vm0, %v1171_v11  }
  0x10   :  { %75 = vst.msk [vmem:[#allocation0 + $0x280] ss:$8 sm:$0xf0] %vm3_vm0, %v1171_v11   ;;  %94 = vst.msk [vmem:[#allocation0 + $0x340] ss:$8 sm:$0xf] %vm3_vm0, %v1174_v12  }
  0x11   :  { %96 = vst.msk [vmem:[#allocation0 + $0x340] ss:$8 sm:$0xf0] %vm3_vm0, %v1174_v12   ;;  %87 = vst.msk [vmem:[#allocation0 + $0x300] ss:$8 sm:$0xf] %vm3_vm0, %v1173_v13  }
  0x12   :  { %89 = vst.msk [vmem:[#allocation0 + $0x300] ss:$8 sm:$0xf0] %vm3_vm0, %v1173_v13   ;;  %108 = vst.msk [vmem:[#allocation0 + $0x3c0] ss:$8 sm:$0xf] %vm3_vm0, %v1176_v14   ;;  %193 = vrot.lane.b32.xlu1 %v1170_v8, %s1305_s12  ;;  %184 = vrot.lane.b32.xlu0 %v1169_v9, %s1305_s12 }
  0x13   :  { %110 = vst.msk [vmem:[#allocation0 + $0x3c0] ss:$8 sm:$0xf0] %vm3_vm0, %v1176_v14   ;;  %101 = vst.msk [vmem:[#allocation0 + $0x380] ss:$8 sm:$0xf] %vm3_vm0, %v1175_v15  }
  0x14   :  { %103 = vst.msk [vmem:[#allocation0 + $0x380] ss:$8 sm:$0xf0] %vm3_vm0, %v1175_v15  }
  0x16   :  { %211 = vrot.lane.b32.xlu1 %v1172_v10, %s1305_s12  ;;  %202 = vrot.lane.b32.xlu0 %v1171_v11, %s1305_s12 }
  0x1a   :  { %229 = vrot.lane.b32.xlu1 %v1174_v12, %s1305_s12  ;;  %220 = vrot.lane.b32.xlu0 %v1173_v13, %s1305_s12 }
  0x1e   :  { %247 = vrot.lane.b32.xlu1 %v1176_v14, %s1305_s12  ;;  %238 = vrot.lane.b32.xlu0 %v1175_v15, %s1305_s12 }
  0x74   :  { %v131_v16 = vpop.permute.xlu1 %130   ;;  %v113_v17 = vpop.permute.xlu0 %112  }
  0x75   :  { %134 = vst.msk [vmem:[#allocation0 + $0x81] ss:$8 sm:$0xf] %vm3_vm0, %v131_v16   ;;  %136 = vst.msk [vmem:[#allocation0 + $0x81] ss:$8 sm:$0xf0] %vm3_vm0, %v131_v16  }
  0x76   :  { %116 = vst.msk [vmem:[#allocation0 + $0x1] ss:$8 sm:$0xf] %vm3_vm0, %v113_v17   ;;  %118 = vst.msk [vmem:[#allocation0 + $0x1] ss:$8 sm:$0xf0] %vm3_vm0, %v113_v17  }
  0x78   :  { %v140_v18 = vpop.permute.xlu1 %139   ;;  %v122_v19 = vpop.permute.xlu0 %121  }
  0x79   :  { %143 = vst.msk [vmem:[#allocation0 + $0xc1] ss:$8 sm:$0xf] %vm3_vm0, %v140_v18   ;;  %145 = vst.msk [vmem:[#allocation0 + $0xc1] ss:$8 sm:$0xf0] %vm3_vm0, %v140_v18  }
  0x7a   :  { %125 = vst.msk [vmem:[#allocation0 + $0x41] ss:$8 sm:$0xf] %vm3_vm0, %v122_v19   ;;  %127 = vst.msk [vmem:[#allocation0 + $0x41] ss:$8 sm:$0xf0] %vm3_vm0, %v122_v19  }
  0x7c   :  { %v350_v20 = vld [vmem:[#allocation0 + $0x80] sm:$0x3]  ;;  %v356_v21 = vld [vmem:[#allocation0 + $0x88] sm:$0x3]  ;;  %v362_v22 = vld [vmem:[#allocation0 + $0x90] sm:$0x3]  ;;  %v158_v23 = vpop.permute.xlu1 %157   ;;  %v149_v24 = vpop.permute.xlu0 %148  }
  0x7d   :  { %1192 = vst [vmem:[%s1829_s1 + $0x20] sm:$0x3] %v350_v20  ;;  %1193 = vst [vmem:[%s1829_s1 + $0x22] sm:$0x3] %v356_v21  ;;  %v368_v25 = vld [vmem:[#allocation0 + $0x98] sm:$0x3] }
  0x7e   :  { %1194 = vst [vmem:[%s1829_s1 + $0x24] sm:$0x3] %v362_v22  ;;  %v374_v26 = vld [vmem:[#allocation0 + $0xa0] sm:$0x3]  ;;  %v380_v27 = vld [vmem:[#allocation0 + $0xa8] sm:$0x3] }
  0x7f   :  { %161 = vst.msk [vmem:[#allocation0 + $0x141] ss:$8 sm:$0xf] %vm3_vm0, %v158_v23   ;;  %163 = vst.msk [vmem:[#allocation0 + $0x141] ss:$8 sm:$0xf0] %vm3_vm0, %v158_v23  }
  0x80   :  { %152 = vst.msk [vmem:[#allocation0 + $0x101] ss:$8 sm:$0xf] %vm3_vm0, %v149_v24   ;;  %154 = vst.msk [vmem:[#allocation0 + $0x101] ss:$8 sm:$0xf0] %vm3_vm0, %v149_v24   ;;  %v176_v37 = vpop.permute.xlu1 %175   ;;  %v167_v38 = vpop.permute.xlu0 %166  }
  0x81   :  { %1195 = vst [vmem:[%s1829_s1 + $0x26] sm:$0x3] %v368_v25  ;;  %1196 = vst [vmem:[%s1829_s1 + $0x28] sm:$0x3] %v374_v26  ;;  %v386_v28 = vld [vmem:[#allocation0 + $0xb0] sm:$0x3] }
  0x82   :  { %1197 = vst [vmem:[%s1829_s1 + $0x2a] sm:$0x3] %v380_v27  ;;  %v392_v29 = vld [vmem:[#allocation0 + $0xb8] sm:$0x3]  ;;  %v257_v30 = vld [vmem:[#allocation0] sm:$0x3] }
  0x83   :  { %1198 = vst [vmem:[%s1829_s1 + $0x2c] sm:$0x3] %v386_v28  ;;  %1199 = vst [vmem:[%s1829_s1 + $0x2e] sm:$0x3] %v392_v29  ;;  %v261_v31 = vld [vmem:[#allocation0 + $0x8] sm:$0x3] }
  0x84   :  { %259 = vst [vmem:[%s1829_s1] sm:$0x3] %v257_v30  ;;  %v266_v32 = vld [vmem:[#allocation0 + $0x10] sm:$0x3]  ;;  %v272_v33 = vld [vmem:[#allocation0 + $0x18] sm:$0x3]  ;;  %v194_v51 = vpop.permute.xlu1 %193   ;;  %v185_v52 = vpop.permute.xlu0 %184  }
  0x85   :  { %1177 = vst [vmem:[%s1829_s1 + $0x2] sm:$0x3] %v261_v31  ;;  %1178 = vst [vmem:[%s1829_s1 + $0x4] sm:$0x3] %v266_v32  ;;  %v278_v34 = vld [vmem:[#allocation0 + $0x20] sm:$0x3] }
  0x86   :  { %1179 = vst [vmem:[%s1829_s1 + $0x6] sm:$0x3] %v272_v33  ;;  %v284_v35 = vld [vmem:[#allocation0 + $0x28] sm:$0x3]  ;;  %v290_v36 = vld [vmem:[#allocation0 + $0x30] sm:$0x3] }
  0x87   :  { %1180 = vst [vmem:[%s1829_s1 + $0x8] sm:$0x3] %v278_v34  ;;  %1181 = vst [vmem:[%s1829_s1 + $0xa] sm:$0x3] %v284_v35  ;;  %v296_v39 = vld [vmem:[#allocation0 + $0x38] sm:$0x3] }
  0x88   :  { %1182 = vst [vmem:[%s1829_s1 + $0xc] sm:$0x3] %v290_v36  ;;  %v398_v40 = vld [vmem:[#allocation0 + $0xc0] sm:$0x3]  ;;  %v404_v41 = vld [vmem:[#allocation0 + $0xc8] sm:$0x3]  ;;  %v212_v1 = vpop.permute.xlu1 %211   ;;  %v203_v2 = vpop.permute.xlu0 %202  }
  0x89   :  { %179 = vst.msk [vmem:[#allocation0 + $0x1c1] ss:$8 sm:$0xf] %vm3_vm0, %v176_v37   ;;  %181 = vst.msk [vmem:[#allocation0 + $0x1c1] ss:$8 sm:$0xf0] %vm3_vm0, %v176_v37  }
  0x8a   :  { %170 = vst.msk [vmem:[#allocation0 + $0x181] ss:$8 sm:$0xf] %vm3_vm0, %v167_v38   ;;  %172 = vst.msk [vmem:[#allocation0 + $0x181] ss:$8 sm:$0xf0] %vm3_vm0, %v167_v38  }
  0x8b   :  { %1183 = vst [vmem:[%s1829_s1 + $0xe] sm:$0x3] %v296_v39  ;;  %1200 = vst [vmem:[%s1829_s1 + $0x30] sm:$0x3] %v398_v40  ;;  %v410_v42 = vld [vmem:[#allocation0 + $0xd0] sm:$0x3] }
  0x8c   :  { %1201 = vst [vmem:[%s1829_s1 + $0x32] sm:$0x3] %v404_v41  ;;  %v416_v43 = vld [vmem:[#allocation0 + $0xd8] sm:$0x3]  ;;  %v422_v44 = vld [vmem:[#allocation0 + $0xe0] sm:$0x3]  ;;  %v230_v15 = vpop.permute.xlu1 %229   ;;  %v221_v16 = vpop.permute.xlu0 %220  }
  0x8d   :  { %1202 = vst [vmem:[%s1829_s1 + $0x34] sm:$0x3] %v410_v42  ;;  %1203 = vst [vmem:[%s1829_s1 + $0x36] sm:$0x3] %v416_v43  ;;  %v428_v45 = vld [vmem:[#allocation0 + $0xe8] sm:$0x3] }
  0x8e   :  { %1204 = vst [vmem:[%s1829_s1 + $0x38] sm:$0x3] %v422_v44  ;;  %v434_v46 = vld [vmem:[#allocation0 + $0xf0] sm:$0x3]  ;;  %v440_v47 = vld [vmem:[#allocation0 + $0xf8] sm:$0x3] }
  0x8f   :  { %1205 = vst [vmem:[%s1829_s1 + $0x3a] sm:$0x3] %v428_v45  ;;  %1206 = vst [vmem:[%s1829_s1 + $0x3c] sm:$0x3] %v434_v46  ;;  %v302_v48 = vld [vmem:[#allocation0 + $0x40] sm:$0x3] }
  0x90   :  { %1207 = vst [vmem:[%s1829_s1 + $0x3e] sm:$0x3] %v440_v47  ;;  %v308_v49 = vld [vmem:[#allocation0 + $0x48] sm:$0x3]  ;;  %v314_v50 = vld [vmem:[#allocation0 + $0x50] sm:$0x3]  ;;  %v248_v29 = vpop.permute.xlu1 %247   ;;  %v239_v30 = vpop.permute.xlu0 %238  }
  0x91   :  { %1184 = vst [vmem:[%s1829_s1 + $0x10] sm:$0x3] %v302_v48  ;;  %1185 = vst [vmem:[%s1829_s1 + $0x12] sm:$0x3] %v308_v49  ;;  %v320_v53 = vld [vmem:[#allocation0 + $0x58] sm:$0x3] }
  0x92   :  { %1186 = vst [vmem:[%s1829_s1 + $0x14] sm:$0x3] %v314_v50  ;;  %v326_v54 = vld [vmem:[#allocation0 + $0x60] sm:$0x3]  ;;  %v332_v55 = vld [vmem:[#allocation0 + $0x68] sm:$0x3] }
  0x93   :  { %197 = vst.msk [vmem:[#allocation0 + $0x241] ss:$8 sm:$0xf] %vm3_vm0, %v194_v51   ;;  %199 = vst.msk [vmem:[#allocation0 + $0x241] ss:$8 sm:$0xf0] %vm3_vm0, %v194_v51  }
  0x94   :  { %188 = vst.msk [vmem:[#allocation0 + $0x201] ss:$8 sm:$0xf] %vm3_vm0, %v185_v52   ;;  %190 = vst.msk [vmem:[#allocation0 + $0x201] ss:$8 sm:$0xf0] %vm3_vm0, %v185_v52  }
  0x95   :  { %1187 = vst [vmem:[%s1829_s1 + $0x16] sm:$0x3] %v320_v53  ;;  %1188 = vst [vmem:[%s1829_s1 + $0x18] sm:$0x3] %v326_v54  ;;  %v338_v56 = vld [vmem:[#allocation0 + $0x70] sm:$0x3] }
  0x96   :  { %1189 = vst [vmem:[%s1829_s1 + $0x1a] sm:$0x3] %v332_v55  ;;  %v344_v57 = vld [vmem:[#allocation0 + $0x78] sm:$0x3]  ;;  %v494_v58 = vld [vmem:[#allocation0 + $0x140] sm:$0x3] }
  0x97   :  { %1190 = vst [vmem:[%s1829_s1 + $0x1c] sm:$0x3] %v338_v56  ;;  %1191 = vst [vmem:[%s1829_s1 + $0x1e] sm:$0x3] %v344_v57  ;;  %v500_v59 = vld [vmem:[#allocation0 + $0x148] sm:$0x3] }
  0x98   :  { %1216 = vst [vmem:[%s1829_s1 + $0x50] sm:$0x3] %v494_v58  ;;  %v506_v60 = vld [vmem:[#allocation0 + $0x150] sm:$0x3]  ;;  %v512_v61 = vld [vmem:[#allocation0 + $0x158] sm:$0x3] }
  0x99   :  { %1217 = vst [vmem:[%s1829_s1 + $0x52] sm:$0x3] %v500_v59  ;;  %1218 = vst [vmem:[%s1829_s1 + $0x54] sm:$0x3] %v506_v60  ;;  %v518_v62 = vld [vmem:[#allocation0 + $0x160] sm:$0x3] }
  0x9a   :  { %1219 = vst [vmem:[%s1829_s1 + $0x56] sm:$0x3] %v512_v61  ;;  %v524_v63 = vld [vmem:[#allocation0 + $0x168] sm:$0x3]  ;;  %v530_v0 = vld [vmem:[#allocation0 + $0x170] sm:$0x3] }
  0x9b   :  { %1220 = vst [vmem:[%s1829_s1 + $0x58] sm:$0x3] %v518_v62  ;;  %1221 = vst [vmem:[%s1829_s1 + $0x5a] sm:$0x3] %v524_v63  ;;  %v536_v3 = vld [vmem:[#allocation0 + $0x178] sm:$0x3] }
  0x9c   :  { %1222 = vst [vmem:[%s1829_s1 + $0x5c] sm:$0x3] %v530_v0  ;;  %v446_v4 = vld [vmem:[#allocation0 + $0x100] sm:$0x3]  ;;  %v452_v5 = vld [vmem:[#allocation0 + $0x108] sm:$0x3] }
  0x9d   :  { %215 = vst.msk [vmem:[#allocation0 + $0x2c1] ss:$8 sm:$0xf] %vm3_vm0, %v212_v1   ;;  %217 = vst.msk [vmem:[#allocation0 + $0x2c1] ss:$8 sm:$0xf0] %vm3_vm0, %v212_v1  }
  0x9e   :  { %206 = vst.msk [vmem:[#allocation0 + $0x281] ss:$8 sm:$0xf] %vm3_vm0, %v203_v2   ;;  %208 = vst.msk [vmem:[#allocation0 + $0x281] ss:$8 sm:$0xf0] %vm3_vm0, %v203_v2  }
  0x9f   :  { %1223 = vst [vmem:[%s1829_s1 + $0x5e] sm:$0x3] %v536_v3  ;;  %1208 = vst [vmem:[%s1829_s1 + $0x40] sm:$0x3] %v446_v4  ;;  %v458_v6 = vld [vmem:[#allocation0 + $0x110] sm:$0x3] }
  0xa0   :  { %1209 = vst [vmem:[%s1829_s1 + $0x42] sm:$0x3] %v452_v5  ;;  %v464_v7 = vld [vmem:[#allocation0 + $0x118] sm:$0x3]  ;;  %v470_v8 = vld [vmem:[#allocation0 + $0x120] sm:$0x3] }
  0xa1   :  { %1210 = vst [vmem:[%s1829_s1 + $0x44] sm:$0x3] %v458_v6  ;;  %1211 = vst [vmem:[%s1829_s1 + $0x46] sm:$0x3] %v464_v7  ;;  %v476_v9 = vld [vmem:[#allocation0 + $0x128] sm:$0x3] }
  0xa2   :  { %1212 = vst [vmem:[%s1829_s1 + $0x48] sm:$0x3] %v470_v8  ;;  %v482_v10 = vld [vmem:[#allocation0 + $0x130] sm:$0x3]  ;;  %v488_v11 = vld [vmem:[#allocation0 + $0x138] sm:$0x3] }
  0xa3   :  { %1213 = vst [vmem:[%s1829_s1 + $0x4a] sm:$0x3] %v476_v9  ;;  %1214 = vst [vmem:[%s1829_s1 + $0x4c] sm:$0x3] %v482_v10  ;;  %v590_v12 = vld [vmem:[#allocation0 + $0x1c0] sm:$0x3] }
  0xa4   :  { %1215 = vst [vmem:[%s1829_s1 + $0x4e] sm:$0x3] %v488_v11  ;;  %v596_v13 = vld [vmem:[#allocation0 + $0x1c8] sm:$0x3]  ;;  %v602_v14 = vld [vmem:[#allocation0 + $0x1d0] sm:$0x3] }
  0xa5   :  { %1232 = vst [vmem:[%s1829_s1 + $0x70] sm:$0x3] %v590_v12  ;;  %1233 = vst [vmem:[%s1829_s1 + $0x72] sm:$0x3] %v596_v13  ;;  %v608_v17 = vld [vmem:[#allocation0 + $0x1d8] sm:$0x3] }
  0xa6   :  { %1234 = vst [vmem:[%s1829_s1 + $0x74] sm:$0x3] %v602_v14  ;;  %v614_v18 = vld [vmem:[#allocation0 + $0x1e0] sm:$0x3]  ;;  %v620_v19 = vld [vmem:[#allocation0 + $0x1e8] sm:$0x3] }
  0xa7   :  { %233 = vst.msk [vmem:[#allocation0 + $0x341] ss:$8 sm:$0xf] %vm3_vm0, %v230_v15   ;;  %235 = vst.msk [vmem:[#allocation0 + $0x341] ss:$8 sm:$0xf0] %vm3_vm0, %v230_v15  }
  0xa8   :  { %224 = vst.msk [vmem:[#allocation0 + $0x301] ss:$8 sm:$0xf] %vm3_vm0, %v221_v16   ;;  %226 = vst.msk [vmem:[#allocation0 + $0x301] ss:$8 sm:$0xf0] %vm3_vm0, %v221_v16  }
  0xa9   :  { %1235 = vst [vmem:[%s1829_s1 + $0x76] sm:$0x3] %v608_v17  ;;  %1236 = vst [vmem:[%s1829_s1 + $0x78] sm:$0x3] %v614_v18  ;;  %v626_v20 = vld [vmem:[#allocation0 + $0x1f0] sm:$0x3] }
  0xaa   :  { %1237 = vst [vmem:[%s1829_s1 + $0x7a] sm:$0x3] %v620_v19  ;;  %v632_v21 = vld [vmem:[#allocation0 + $0x1f8] sm:$0x3]  ;;  %v542_v22 = vld [vmem:[#allocation0 + $0x180] sm:$0x3] }
  0xab   :  { %1238 = vst [vmem:[%s1829_s1 + $0x7c] sm:$0x3] %v626_v20  ;;  %1239 = vst [vmem:[%s1829_s1 + $0x7e] sm:$0x3] %v632_v21  ;;  %v548_v23 = vld [vmem:[#allocation0 + $0x188] sm:$0x3] }
  0xac   :  { %1224 = vst [vmem:[%s1829_s1 + $0x60] sm:$0x3] %v542_v22  ;;  %v554_v24 = vld [vmem:[#allocation0 + $0x190] sm:$0x3]  ;;  %v560_v25 = vld [vmem:[#allocation0 + $0x198] sm:$0x3] }
  0xad   :  { %1225 = vst [vmem:[%s1829_s1 + $0x62] sm:$0x3] %v548_v23  ;;  %1226 = vst [vmem:[%s1829_s1 + $0x64] sm:$0x3] %v554_v24  ;;  %v566_v26 = vld [vmem:[#allocation0 + $0x1a0] sm:$0x3] }
  0xae   :  { %1227 = vst [vmem:[%s1829_s1 + $0x66] sm:$0x3] %v560_v25  ;;  %v572_v27 = vld [vmem:[#allocation0 + $0x1a8] sm:$0x3]  ;;  %v578_v28 = vld [vmem:[#allocation0 + $0x1b0] sm:$0x3] }
  0xaf   :  { %1228 = vst [vmem:[%s1829_s1 + $0x68] sm:$0x3] %v566_v26  ;;  %1229 = vst [vmem:[%s1829_s1 + $0x6a] sm:$0x3] %v572_v27  ;;  %v584_v31 = vld [vmem:[#allocation0 + $0x1b8] sm:$0x3] }
  0xb0   :  { %1230 = vst [vmem:[%s1829_s1 + $0x6c] sm:$0x3] %v578_v28  ;;  %v686_v32 = vld [vmem:[#allocation0 + $0x240] sm:$0x3]  ;;  %v692_v33 = vld [vmem:[#allocation0 + $0x248] sm:$0x3] }
  0xb1   :  { %251 = vst.msk [vmem:[#allocation0 + $0x3c1] ss:$8 sm:$0xf] %vm3_vm0, %v248_v29   ;;  %253 = vst.msk [vmem:[#allocation0 + $0x3c1] ss:$8 sm:$0xf0] %vm3_vm0, %v248_v29  }
  0xb2   :  { %242 = vst.msk [vmem:[#allocation0 + $0x381] ss:$8 sm:$0xf] %vm3_vm0, %v239_v30   ;;  %244 = vst.msk [vmem:[#allocation0 + $0x381] ss:$8 sm:$0xf0] %vm3_vm0, %v239_v30  }
  0xb3   :  { %1231 = vst [vmem:[%s1829_s1 + $0x6e] sm:$0x3] %v584_v31  ;;  %1248 = vst [vmem:[%s1829_s1 + $0x90] sm:$0x3] %v686_v32  ;;  %v698_v34 = vld [vmem:[#allocation0 + $0x250] sm:$0x3] }
  0xb4   :  { %1249 = vst [vmem:[%s1829_s1 + $0x92] sm:$0x3] %v692_v33  ;;  %v704_v35 = vld [vmem:[#allocation0 + $0x258] sm:$0x3]  ;;  %v710_v36 = vld [vmem:[#allocation0 + $0x260] sm:$0x3] }
  0xb5   :  { %1250 = vst [vmem:[%s1829_s1 + $0x94] sm:$0x3] %v698_v34  ;;  %1251 = vst [vmem:[%s1829_s1 + $0x96] sm:$0x3] %v704_v35  ;;  %v716_v37 = vld [vmem:[#allocation0 + $0x268] sm:$0x3] }
  0xb6   :  { %1252 = vst [vmem:[%s1829_s1 + $0x98] sm:$0x3] %v710_v36  ;;  %v722_v38 = vld [vmem:[#allocation0 + $0x270] sm:$0x3]  ;;  %v728_v39 = vld [vmem:[#allocation0 + $0x278] sm:$0x3] }
  0xb7   :  { %1253 = vst [vmem:[%s1829_s1 + $0x9a] sm:$0x3] %v716_v37  ;;  %1254 = vst [vmem:[%s1829_s1 + $0x9c] sm:$0x3] %v722_v38  ;;  %v638_v40 = vld [vmem:[#allocation0 + $0x200] sm:$0x3] }
  0xb8   :  { %1255 = vst [vmem:[%s1829_s1 + $0x9e] sm:$0x3] %v728_v39  ;;  %v644_v41 = vld [vmem:[#allocation0 + $0x208] sm:$0x3]  ;;  %v650_v42 = vld [vmem:[#allocation0 + $0x210] sm:$0x3] }
  0xb9   :  { %1240 = vst [vmem:[%s1829_s1 + $0x80] sm:$0x3] %v638_v40  ;;  %1241 = vst [vmem:[%s1829_s1 + $0x82] sm:$0x3] %v644_v41  ;;  %v656_v43 = vld [vmem:[#allocation0 + $0x218] sm:$0x3] }
  0xba   :  { %1242 = vst [vmem:[%s1829_s1 + $0x84] sm:$0x3] %v650_v42  ;;  %v662_v44 = vld [vmem:[#allocation0 + $0x220] sm:$0x3]  ;;  %v668_v45 = vld [vmem:[#allocation0 + $0x228] sm:$0x3] }
  0xbb   :  { %1243 = vst [vmem:[%s1829_s1 + $0x86] sm:$0x3] %v656_v43  ;;  %1244 = vst [vmem:[%s1829_s1 + $0x88] sm:$0x3] %v662_v44  ;;  %v674_v46 = vld [vmem:[#allocation0 + $0x230] sm:$0x3] }
  0xbc   :  { %1245 = vst [vmem:[%s1829_s1 + $0x8a] sm:$0x3] %v668_v45  ;;  %v680_v47 = vld [vmem:[#allocation0 + $0x238] sm:$0x3]  ;;  %v782_v48 = vld [vmem:[#allocation0 + $0x2c0] sm:$0x3] }
  0xbd   :  { %1246 = vst [vmem:[%s1829_s1 + $0x8c] sm:$0x3] %v674_v46  ;;  %1247 = vst [vmem:[%s1829_s1 + $0x8e] sm:$0x3] %v680_v47  ;;  %v788_v49 = vld [vmem:[#allocation0 + $0x2c8] sm:$0x3] }
  0xbe   :  { %1264 = vst [vmem:[%s1829_s1 + $0xb0] sm:$0x3] %v782_v48  ;;  %v794_v50 = vld [vmem:[#allocation0 + $0x2d0] sm:$0x3]  ;;  %v800_v51 = vld [vmem:[#allocation0 + $0x2d8] sm:$0x3] }
  0xbf   :  { %1265 = vst [vmem:[%s1829_s1 + $0xb2] sm:$0x3] %v788_v49  ;;  %1266 = vst [vmem:[%s1829_s1 + $0xb4] sm:$0x3] %v794_v50  ;;  %v806_v52 = vld [vmem:[#allocation0 + $0x2e0] sm:$0x3] }
  0xc0   :  { %1267 = vst [vmem:[%s1829_s1 + $0xb6] sm:$0x3] %v800_v51  ;;  %v812_v53 = vld [vmem:[#allocation0 + $0x2e8] sm:$0x3]  ;;  %v818_v54 = vld [vmem:[#allocation0 + $0x2f0] sm:$0x3] }
  0xc1   :  { %1268 = vst [vmem:[%s1829_s1 + $0xb8] sm:$0x3] %v806_v52  ;;  %1269 = vst [vmem:[%s1829_s1 + $0xba] sm:$0x3] %v812_v53  ;;  %v824_v55 = vld [vmem:[#allocation0 + $0x2f8] sm:$0x3] }
  0xc2   :  { %1270 = vst [vmem:[%s1829_s1 + $0xbc] sm:$0x3] %v818_v54  ;;  %v734_v56 = vld [vmem:[#allocation0 + $0x280] sm:$0x3]  ;;  %v740_v57 = vld [vmem:[#allocation0 + $0x288] sm:$0x3] }
  0xc3   :  { %1271 = vst [vmem:[%s1829_s1 + $0xbe] sm:$0x3] %v824_v55  ;;  %1256 = vst [vmem:[%s1829_s1 + $0xa0] sm:$0x3] %v734_v56  ;;  %v746_v58 = vld [vmem:[#allocation0 + $0x290] sm:$0x3] }
  0xc4   :  { %1257 = vst [vmem:[%s1829_s1 + $0xa2] sm:$0x3] %v740_v57  ;;  %v752_v59 = vld [vmem:[#allocation0 + $0x298] sm:$0x3]  ;;  %v758_v60 = vld [vmem:[#allocation0 + $0x2a0] sm:$0x3] }
  0xc5   :  { %1258 = vst [vmem:[%s1829_s1 + $0xa4] sm:$0x3] %v746_v58  ;;  %1259 = vst [vmem:[%s1829_s1 + $0xa6] sm:$0x3] %v752_v59  ;;  %v764_v61 = vld [vmem:[#allocation0 + $0x2a8] sm:$0x3] }
  0xc6   :  { %1260 = vst [vmem:[%s1829_s1 + $0xa8] sm:$0x3] %v758_v60  ;;  %v770_v62 = vld [vmem:[#allocation0 + $0x2b0] sm:$0x3]  ;;  %v776_v63 = vld [vmem:[#allocation0 + $0x2b8] sm:$0x3] }
  0xc7   :  { %1261 = vst [vmem:[%s1829_s1 + $0xaa] sm:$0x3] %v764_v61  ;;  %1262 = vst [vmem:[%s1829_s1 + $0xac] sm:$0x3] %v770_v62  ;;  %v878_v0 = vld [vmem:[#allocation0 + $0x340] sm:$0x3] }
  0xc8   :  { %1263 = vst [vmem:[%s1829_s1 + $0xae] sm:$0x3] %v776_v63  ;;  %v884_v1 = vld [vmem:[#allocation0 + $0x348] sm:$0x3]  ;;  %v890_v2 = vld [vmem:[#allocation0 + $0x350] sm:$0x3] }
  0xc9   :  { %1280 = vst [vmem:[%s1829_s1 + $0xd0] sm:$0x3] %v878_v0  ;;  %1281 = vst [vmem:[%s1829_s1 + $0xd2] sm:$0x3] %v884_v1  ;;  %v896_v3 = vld [vmem:[#allocation0 + $0x358] sm:$0x3] }
  0xca   :  { %1282 = vst [vmem:[%s1829_s1 + $0xd4] sm:$0x3] %v890_v2  ;;  %v902_v4 = vld [vmem:[#allocation0 + $0x360] sm:$0x3]  ;;  %v908_v5 = vld [vmem:[#allocation0 + $0x368] sm:$0x3] }
  0xcb   :  { %1283 = vst [vmem:[%s1829_s1 + $0xd6] sm:$0x3] %v896_v3  ;;  %1284 = vst [vmem:[%s1829_s1 + $0xd8] sm:$0x3] %v902_v4  ;;  %v914_v6 = vld [vmem:[#allocation0 + $0x370] sm:$0x3] }
  0xcc   :  { %1285 = vst [vmem:[%s1829_s1 + $0xda] sm:$0x3] %v908_v5  ;;  %v920_v7 = vld [vmem:[#allocation0 + $0x378] sm:$0x3]  ;;  %v830_v8 = vld [vmem:[#allocation0 + $0x300] sm:$0x3] }
  0xcd   :  { %1286 = vst [vmem:[%s1829_s1 + $0xdc] sm:$0x3] %v914_v6  ;;  %1287 = vst [vmem:[%s1829_s1 + $0xde] sm:$0x3] %v920_v7  ;;  %v836_v9 = vld [vmem:[#allocation0 + $0x308] sm:$0x3] }
  0xce   :  { %1272 = vst [vmem:[%s1829_s1 + $0xc0] sm:$0x3] %v830_v8  ;;  %v842_v10 = vld [vmem:[#allocation0 + $0x310] sm:$0x3]  ;;  %v848_v11 = vld [vmem:[#allocation0 + $0x318] sm:$0x3] }
  0xcf   :  { %1273 = vst [vmem:[%s1829_s1 + $0xc2] sm:$0x3] %v836_v9  ;;  %1274 = vst [vmem:[%s1829_s1 + $0xc4] sm:$0x3] %v842_v10  ;;  %v854_v12 = vld [vmem:[#allocation0 + $0x320] sm:$0x3] }
  0xd0   :  { %1275 = vst [vmem:[%s1829_s1 + $0xc6] sm:$0x3] %v848_v11  ;;  %v860_v13 = vld [vmem:[#allocation0 + $0x328] sm:$0x3]  ;;  %v866_v14 = vld [vmem:[#allocation0 + $0x330] sm:$0x3] }
  0xd1   :  { %1276 = vst [vmem:[%s1829_s1 + $0xc8] sm:$0x3] %v854_v12  ;;  %1277 = vst [vmem:[%s1829_s1 + $0xca] sm:$0x3] %v860_v13  ;;  %v872_v15 = vld [vmem:[#allocation0 + $0x338] sm:$0x3] }
  0xd2   :  { %1278 = vst [vmem:[%s1829_s1 + $0xcc] sm:$0x3] %v866_v14  ;;  %v974_v16 = vld [vmem:[#allocation0 + $0x3c0] sm:$0x3]  ;;  %v980_v17 = vld [vmem:[#allocation0 + $0x3c8] sm:$0x3] }
  0xd3   :  { %1279 = vst [vmem:[%s1829_s1 + $0xce] sm:$0x3] %v872_v15  ;;  %1296 = vst [vmem:[%s1829_s1 + $0xf0] sm:$0x3] %v974_v16  ;;  %v986_v18 = vld [vmem:[#allocation0 + $0x3d0] sm:$0x3] }
  0xd4   :  { %1297 = vst [vmem:[%s1829_s1 + $0xf2] sm:$0x3] %v980_v17  ;;  %v992_v19 = vld [vmem:[#allocation0 + $0x3d8] sm:$0x3]  ;;  %v998_v20 = vld [vmem:[#allocation0 + $0x3e0] sm:$0x3] }
  0xd5   :  { %1298 = vst [vmem:[%s1829_s1 + $0xf4] sm:$0x3] %v986_v18  ;;  %1299 = vst [vmem:[%s1829_s1 + $0xf6] sm:$0x3] %v992_v19  ;;  %v1004_v21 = vld [vmem:[#allocation0 + $0x3e8] sm:$0x3] }
  0xd6   :  { %1300 = vst [vmem:[%s1829_s1 + $0xf8] sm:$0x3] %v998_v20  ;;  %v1010_v22 = vld [vmem:[#allocation0 + $0x3f0] sm:$0x3]  ;;  %v1016_v23 = vld [vmem:[#allocation0 + $0x3f8] sm:$0x3] }
  0xd7   :  { %1301 = vst [vmem:[%s1829_s1 + $0xfa] sm:$0x3] %v1004_v21  ;;  %1302 = vst [vmem:[%s1829_s1 + $0xfc] sm:$0x3] %v1010_v22  ;;  %v926_v24 = vld [vmem:[#allocation0 + $0x380] sm:$0x3] }
  0xd8   :  { %1303 = vst [vmem:[%s1829_s1 + $0xfe] sm:$0x3] %v1016_v23  ;;  %v932_v25 = vld [vmem:[#allocation0 + $0x388] sm:$0x3]  ;;  %v938_v26 = vld [vmem:[#allocation0 + $0x390] sm:$0x3] }
  0xd9   :  { %1288 = vst [vmem:[%s1829_s1 + $0xe0] sm:$0x3] %v926_v24  ;;  %1289 = vst [vmem:[%s1829_s1 + $0xe2] sm:$0x3] %v932_v25  ;;  %v944_v27 = vld [vmem:[#allocation0 + $0x398] sm:$0x3] }
  0xda   :  { %1290 = vst [vmem:[%s1829_s1 + $0xe4] sm:$0x3] %v938_v26  ;;  %v950_v28 = vld [vmem:[#allocation0 + $0x3a0] sm:$0x3]  ;;  %v956_v29 = vld [vmem:[#allocation0 + $0x3a8] sm:$0x3] }
  0xdb   :  { %1291 = vst [vmem:[%s1829_s1 + $0xe6] sm:$0x3] %v944_v27  ;;  %1292 = vst [vmem:[%s1829_s1 + $0xe8] sm:$0x3] %v950_v28  ;;  %v962_v30 = vld [vmem:[#allocation0 + $0x3b0] sm:$0x3] }
  0xdc   :  { %1293 = vst [vmem:[%s1829_s1 + $0xea] sm:$0x3] %v956_v29  ;;  %v968_v31 = vld [vmem:[#allocation0 + $0x3b8] sm:$0x3]  ;;  %1294 = vst [vmem:[%s1829_s1 + $0xec] sm:$0x3] %v962_v30 }
  0xdd   :  { %1295 = vst [vmem:[%s1829_s1 + $0xee] sm:$0x3] %v968_v31 }

</bundles_post_ra>
